<compile_context>
chip_gen: v6e
topology: v6e:2x2x1
jax: 0.10.0
libtpu: 0.0.40
codegen_flags: <defaults>
</compile_context>

<pallas_src>
import jax
import jax.numpy as jnp
from jax.experimental import pallas as pl
from jax.experimental.pallas import tpu as pltpu

# ---------------------------------------------------------------------------
# Small, deterministic synthetic hyper-parameters.
# ---------------------------------------------------------------------------
B = 2            # batch
T = 8            # sequence length (video frames)
CIN = 3          # frame channels (RGB)
HW = 16          # spatial extent (H == W)
FEAT = 128       # CNN feature dim (stand-in for resnet.fc.in_features == 512)
HIDDEN = 32      # LSTM hidden_dim
LAYERS = 2       # LSTM layer_dim
NUM_CLASSES = 8  # fc1 output classes

K_RAW = 9 * CIN                  # im2col contraction size (3*3*CIN = 27)
K_PAD = 32                       # contraction padded to an MXU-friendly size
N_FRAMES = B * T                 # frames per forward (16), ordered time-major (t, b)
PIX_PER_FRAME = HW * HW          # 256
N_PIX = N_FRAMES * PIX_PER_FRAME # im2col rows (4096)

FRAMES_PER_CHUNK = 2                              # frames handled per grid step
N_CHUNKS = N_FRAMES // FRAMES_PER_CHUNK           # grid = (8,)
PIX_PER_CHUNK = FRAMES_PER_CHUNK * PIX_PER_FRAME  # 512 im2col rows per step


# ---------------------------------------------------------------------------
# Fused kernel:
#   every grid step : conv chunk (per-frame matmul + ReLU + GAP) -> feats scratch
#   last grid step  : multi-layer LSTM + select-gather + fc1 -> out
# ---------------------------------------------------------------------------
def _make_fused_kernel(num_layers):
    def kernel(seq_ref,                        # SMEM (B,) int32, scalar-prefetched
               patches_ref,                    # VMEM (PIX_PER_CHUNK, K_PAD) bf16
               conv_w_ref,                     # VMEM (K_PAD, FEAT)          bf16
               conv_b_ref,                     # VMEM (1, FEAT)              f32
               *rest):
        lstm_refs = rest[:3 * num_layers]      # per layer: w_ih(bf16), w_hh(bf16), bias(f32)
        fc_w_ref, fc_b_ref, out_ref, feats_sc = rest[3 * num_layers:]

        step = pl.program_id(0)

        # ---- CNN chunk: per-frame (256,32)x(32,128) matmul + bias + ReLU + GAP.
        # Live tile per frame is only (256,128) f32 = 128 KiB (32 vregs).
        conv_w = conv_w_ref[...]
        conv_b = conv_b_ref[...]
        frame_rows = []
        for f in range(FRAMES_PER_CHUNK):
            p = patches_ref[f * PIX_PER_FRAME:(f + 1) * PIX_PER_FRAME, :]   # (256,32) bf16
            conv = jnp.dot(p, conv_w, preferred_element_type=jnp.float32)   # (256,128) f32
            conv = jnp.maximum(conv + conv_b, 0.0)
            frame_rows.append(jnp.mean(conv, axis=0, keepdims=True))        # (1,128)
        feats_sc[step] = jnp.concatenate(frame_rows, axis=0)                # (2,128)

        # ---- LSTM + gather + fc1 only once, on the final grid step.
        @pl.when(step == pl.num_programs(0) - 1)
        def _():
            # frames were laid out time-major: row (t*B + b)
            feats = feats_sc[...].reshape(T * B, FEAT)                      # (16,128) f32

            layer_in = feats
            h_list = []
            for layer in range(num_layers):
                w_ih = lstm_refs[3 * layer][...]                            # (F_in, 4H) bf16
                w_hh = lstm_refs[3 * layer + 1][...]                        # (H, 4H)    bf16
                bias = lstm_refs[3 * layer + 2][...]                        # (1, 4H)    f32

                # Hoisted, time-independent input projection (+ folded b_ih + b_hh),
                # kept as a value (2 vregs) -- no VMEM round trip.
                xp = jnp.dot(layer_in.astype(jnp.bfloat16), w_ih,
                             preferred_element_type=jnp.float32) + bias     # (T*B, 4H)

                h = jnp.zeros((B, HIDDEN), jnp.float32)
                c = jnp.zeros((B, HIDDEN), jnp.float32)
                h_list = []
                for t in range(T):                                          # fully unrolled
                    gates = xp[t * B:(t + 1) * B, :] + jnp.dot(
                        h.astype(jnp.bfloat16), w_hh,
                        preferred_element_type=jnp.float32)                 # (B, 4H) f32
                    # Whole-vreg activations (one sigmoid + one tanh), slice after.
                    sig = jax.nn.sigmoid(gates)
                    th = jnp.tanh(gates)
                    i_g = sig[:, 0 * HIDDEN:1 * HIDDEN]
                    f_g = sig[:, 1 * HIDDEN:2 * HIDDEN]
                    g_g = th[:, 2 * HIDDEN:3 * HIDDEN]
                    o_g = sig[:, 3 * HIDDEN:4 * HIDDEN]
                    c = f_g * c + i_g * g_g
                    h = o_g * jnp.tanh(c)
                    h_list.append(h)                                        # values, no VMEM

                if layer + 1 < num_layers:
                    layer_in = jnp.concatenate(h_list, axis=0)              # (T*B, H)

            # ---- Select-based gather RNN_out[b, seq_lengths[b], :] + fc1.
            # (PyTorch convention: seq_lengths[b] used directly as the time index.)
            rows = []
            for b in range(B):
                sv = seq_ref[b]                          # SMEM scalar
                row = h_list[0][b:b + 1, :]              # (1, H)
                for t in range(1, T):
                    row = jnp.where(sv == t, h_list[t][b:b + 1, :], row)
                rows.append(row)
            gathered = jnp.concatenate(rows, axis=0)                        # (B, H)
            out_ref[...] = (jnp.dot(gathered.astype(jnp.bfloat16), fc_w_ref[...],
                                    preferred_element_type=jnp.float32)
                            + fc_b_ref[...])
    return kernel


# ---------------------------------------------------------------------------
# XLA-side glue: lane-dense im2col patch construction.
# Contraction order is k = c*9 + dy*3 + dx (channel-major); taps are sliced
# from a (F, HW+2, (HW+2)*CIN)-shaped view so no 3-wide lane-sparse ops occur.
# ---------------------------------------------------------------------------
def _im2col(x_cnn):
    # x_cnn: (B, T, CIN, HW, HW) -> frames ordered time-major (t, b), channels-last.
    x = jnp.transpose(x_cnn, (1, 0, 3, 4, 2)).reshape(N_FRAMES, HW, HW, CIN)
    x = jnp.pad(x, ((0, 0), (1, 1), (1, 1), (0, 0)))          # conv padding = 1
    xv = x.reshape(N_FRAMES, HW + 2, (HW + 2) * CIN)          # lane dim 54
    taps = [xv[:, dy:dy + HW, dx * CIN:dx * CIN + HW * CIN]   # (F, HW, HW*CIN)
            for dy in range(3) for dx in range(3)]
    patches = jnp.stack(taps, axis=-1)                        # (F, HW, HW*CIN, 9)
    patches = patches.reshape(N_PIX, K_RAW)                   # k = c*9 + dy*3 + dx
    patches = jnp.pad(patches, ((0, 0), (0, K_PAD - K_RAW)))  # pad K 27 -> 32
    return patches.astype(jnp.bfloat16)                       # bf16 MXU operand


# ---------------------------------------------------------------------------
# Full forward pass (mirrors CNNLSTMModel.forward) - one pallas_call.
# ---------------------------------------------------------------------------
def cnn_lstm_forward(x_cnn, seq_lengths, params):
    patches = _im2col(x_cnn.astype(jnp.float32))                            # (N_PIX, K_PAD) bf16

    # conv weight (3,3,CIN,FEAT) -> (CIN,3,3,FEAT) -> (27,FEAT), matching the
    # patch contraction order, zero-padded to K_PAD, bf16.
    conv_w = jnp.transpose(params["conv_w"], (2, 0, 1, 3)).reshape(K_RAW, FEAT)
    conv_w = jnp.pad(conv_w, ((0, K_PAD - K_RAW), (0, 0))).astype(jnp.bfloat16)

    flat_lstm = []
    for (w_ih, w_hh, bias) in params["lstm"]:
        flat_lstm += [w_ih.astype(jnp.bfloat16), w_hh.astype(jnp.bfloat16), bias]

    fc_w = params["fc_w"].astype(jnp.bfloat16)

    operands = [patches, conv_w, params["conv_b"], *flat_lstm, fc_w, params["fc_b"]]

    in_specs = [pl.BlockSpec((PIX_PER_CHUNK, K_PAD), lambda i, s: (i, 0))]   # patches: tiled
    in_specs += [pl.BlockSpec(op.shape, lambda i, s: (0, 0))                 # weights: resident
                 for op in operands[1:]]

    grid_spec = pltpu.PrefetchScalarGridSpec(
        num_scalar_prefetch=1,                           # seq_lengths -> SMEM
        grid=(N_CHUNKS,),
        in_specs=in_specs,
        out_specs=pl.BlockSpec((B, NUM_CLASSES), lambda i, s: (0, 0)),
        scratch_shapes=[
            pltpu.VMEM((N_CHUNKS, FRAMES_PER_CHUNK, FEAT), jnp.float32),  # per-frame feats
        ],
    )

    fused = pl.pallas_call(
        _make_fused_kernel(LAYERS),
        out_shape=jax.ShapeDtypeStruct((B, NUM_CLASSES), jnp.float32),
        grid_spec=grid_spec,
        compiler_params=pltpu.CompilerParams(
            dimension_semantics=("arbitrary",),          # feats accumulate across steps
            vmem_limit_bytes=32 * 1024 * 1024,
        ),
    )
    seq = jnp.clip(seq_lengths.astype(jnp.int32), 0, T - 1)   # guard the time index
    return fused(seq, *operands)


# ---------------------------------------------------------------------------
# Deterministic parameter init (PyTorch gate order i,f,g,o; b_ih+b_hh folded).
# ---------------------------------------------------------------------------
def init_params(key):
    ks = jax.random.split(key, 16)
    params = {}
    params["conv_w"] = 0.1 * jax.random.normal(ks[0], (3, 3, CIN, FEAT), jnp.float32)
    params["conv_b"] = 0.1 * jax.random.normal(ks[1], (1, FEAT), jnp.float32)
    lstm = []
    idx = 2
    for layer in range(LAYERS):
        f_in = FEAT if layer == 0 else HIDDEN
        w_ih = 0.1 * jax.random.normal(ks[idx], (f_in, 4 * HIDDEN), jnp.float32); idx += 1
        w_hh = 0.1 * jax.random.normal(ks[idx], (HIDDEN, 4 * HIDDEN), jnp.float32); idx += 1
        b_ih = 0.1 * jax.random.normal(ks[idx], (4 * HIDDEN,), jnp.float32); idx += 1
        b_hh = 0.1 * jax.random.normal(ks[idx], (4 * HIDDEN,), jnp.float32); idx += 1
        lstm.append((w_ih, w_hh, (b_ih + b_hh).reshape(1, 4 * HIDDEN)))
    params["lstm"] = lstm
    params["fc_w"] = 0.1 * jax.random.normal(ks[idx], (HIDDEN, NUM_CLASSES), jnp.float32); idx += 1
    params["fc_b"] = 0.1 * jax.random.normal(ks[idx], (1, NUM_CLASSES), jnp.float32)
    return params


if __name__ == "__main__":
    root = jax.random.PRNGKey(0)
    k_x, k_p = jax.random.split(root)
    params = init_params(k_p)
    x_cnn = jax.random.normal(k_x, (B, T, CIN, HW, HW), jnp.float32)
    seq_lengths = jnp.array([3, 7], dtype=jnp.int32)   # per-sample time index (< T)

    fwd = jax.jit(cnn_lstm_forward)
    out = fwd(x_cnn, seq_lengths, params)
    out = jax.block_until_ready(out)
    assert out.shape == (B, NUM_CLASSES)
    assert bool(jnp.all(jnp.isfinite(out)))
    print("KERNEL_OK")
</pallas_src>

<mosaic_0001>
module attributes {stable_mosaic.version = 11 : i64} {
  func.func @kernel(%arg0: i32, %arg1: memref<2xi32, #tpu.memory_space<smem>>, %arg2: memref<512x32xbf16, #tpu.memory_space<vmem>>, %arg3: memref<32x128xbf16, #tpu.memory_space<vmem>>, %arg4: memref<1x128xf32, #tpu.memory_space<vmem>>, %arg5: memref<128x128xbf16, #tpu.memory_space<vmem>>, %arg6: memref<32x128xbf16, #tpu.memory_space<vmem>>, %arg7: memref<1x128xf32, #tpu.memory_space<vmem>>, %arg8: memref<32x128xbf16, #tpu.memory_space<vmem>>, %arg9: memref<32x128xbf16, #tpu.memory_space<vmem>>, %arg10: memref<1x128xf32, #tpu.memory_space<vmem>>, %arg11: memref<32x8xbf16, #tpu.memory_space<vmem>>, %arg12: memref<1x8xf32, #tpu.memory_space<vmem>>, %arg13: memref<2x8xf32, #tpu.memory_space<vmem>>, %arg14: memref<8x2x128xf32, #tpu.memory_space<vmem>>) attributes {dimension_semantics = [#tpu.dimension_semantics<arbitrary>], iteration_bounds = array<i64: 8>, scalar_prefetch = 1 : i64, scratch_operands = 1 : i64, tpu.core_type = #tpu.core_type<tc>, window_params = [{transform_indices = @transform_0, window_bounds = array<i64: 512, 32>}, {pipeline_mode = #tpu.pipeline_mode<synchronous>, transform_indices = @transform_1, window_bounds = array<i64: 32, 128>}, {pipeline_mode = #tpu.pipeline_mode<synchronous>, transform_indices = @transform_2, window_bounds = array<i64: 1, 128>}, {pipeline_mode = #tpu.pipeline_mode<synchronous>, transform_indices = @transform_3, window_bounds = array<i64: 128, 128>}, {pipeline_mode = #tpu.pipeline_mode<synchronous>, transform_indices = @transform_4, window_bounds = array<i64: 32, 128>}, {pipeline_mode = #tpu.pipeline_mode<synchronous>, transform_indices = @transform_5, window_bounds = array<i64: 1, 128>}, {pipeline_mode = #tpu.pipeline_mode<synchronous>, transform_indices = @transform_6, window_bounds = array<i64: 32, 128>}, {pipeline_mode = #tpu.pipeline_mode<synchronous>, transform_indices = @transform_7, window_bounds = array<i64: 32, 128>}, {pipeline_mode = #tpu.pipeline_mode<synchronous>, transform_indices = @transform_8, window_bounds = array<i64: 1, 128>}, {pipeline_mode = #tpu.pipeline_mode<synchronous>, transform_indices = @transform_9, window_bounds = array<i64: 32, 8>}, {pipeline_mode = #tpu.pipeline_mode<synchronous>, transform_indices = @transform_10, window_bounds = array<i64: 1, 8>}, {pipeline_mode = #tpu.pipeline_mode<synchronous>, transform_indices = @transform_11, window_bounds = array<i64: 2, 8>}]} {
    %c0 = arith.constant 0 : index
    %c0_0 = arith.constant 0 : index
    %0 = vector.load %arg3[%c0, %c0_0] : memref<32x128xbf16, #tpu.memory_space<vmem>>, vector<32x128xbf16>
    %c0_1 = arith.constant 0 : index
    %c0_2 = arith.constant 0 : index
    %1 = vector.load %arg4[%c0_1, %c0_2] : memref<1x128xf32, #tpu.memory_space<vmem>>, vector<1x128xf32>
    %c0_3 = arith.constant 0 : index
    %c0_4 = arith.constant 0 : index
    %2 = vector.load %arg2[%c0_3, %c0_4] : memref<512x32xbf16, #tpu.memory_space<vmem>>, vector<256x32xbf16>
    %cst = arith.constant dense<0.000000e+00> : vector<256x128xf32>
    %3 = tpu.matmul %2, %0, %cst {dimension_numbers = #tpu.dot_dimension_numbers<[1], [0], [0], [1], [0, 0, 1, 1], [], []>} : vector<256x32xbf16>, vector<32x128xbf16>, vector<256x128xf32> -> vector<256x128xf32>
    %4 = vector.broadcast %1 : vector<1x128xf32> to vector<256x128xf32>
    %5 = arith.addf %3, %4 : vector<256x128xf32>
    %cst_5 = arith.constant 0.000000e+00 : f32
    %6 = vector.broadcast %cst_5 : f32 to vector<256x128xf32>
    %7 = arith.maximumf %5, %6 : vector<256x128xf32>
    %cst_6 = arith.constant dense<0.000000e+00> : vector<128xf32>
    %8 = vector.multi_reduction <add>, %7, %cst_6 [0] : vector<256x128xf32> to vector<128xf32>
    %9 = vector.shape_cast %8 : vector<128xf32> to vector<1x128xf32>
    %cst_7 = arith.constant 2.560000e+02 : f32
    %10 = vector.broadcast %cst_7 : f32 to vector<1x128xf32>
    %11 = arith.divf %9, %10 : vector<1x128xf32>
    %c256 = arith.constant 256 : index
    %c0_8 = arith.constant 0 : index
    %12 = vector.load %arg2[%c256, %c0_8] : memref<512x32xbf16, #tpu.memory_space<vmem>>, vector<256x32xbf16>
    %cst_9 = arith.constant dense<0.000000e+00> : vector<256x128xf32>
    %13 = tpu.matmul %12, %0, %cst_9 {dimension_numbers = #tpu.dot_dimension_numbers<[1], [0], [0], [1], [0, 0, 1, 1], [], []>} : vector<256x32xbf16>, vector<32x128xbf16>, vector<256x128xf32> -> vector<256x128xf32>
    %14 = vector.broadcast %1 : vector<1x128xf32> to vector<256x128xf32>
    %15 = arith.addf %13, %14 : vector<256x128xf32>
    %cst_10 = arith.constant 0.000000e+00 : f32
    %16 = vector.broadcast %cst_10 : f32 to vector<256x128xf32>
    %17 = arith.maximumf %15, %16 : vector<256x128xf32>
    %cst_11 = arith.constant dense<0.000000e+00> : vector<128xf32>
    %18 = vector.multi_reduction <add>, %17, %cst_11 [0] : vector<256x128xf32> to vector<128xf32>
    %19 = vector.shape_cast %18 : vector<128xf32> to vector<1x128xf32>
    %cst_12 = arith.constant 2.560000e+02 : f32
    %20 = vector.broadcast %cst_12 : f32 to vector<1x128xf32>
    %21 = arith.divf %19, %20 : vector<1x128xf32>
    %22 = tpu.concatenate %11, %21 in 0 : vector<1x128xf32>, vector<1x128xf32> -> vector<2x128xf32>
    %23 = arith.index_cast %arg0 : i32 to index
    %c0_13 = arith.constant 0 : index
    %c0_14 = arith.constant 0 : index
    %24 = vector.load %arg14[%23, %c0_13, %c0_14] : memref<8x2x128xf32, #tpu.memory_space<vmem>>, vector<1x2x128xf32>
    %25 = vector.shape_cast %24 : vector<1x2x128xf32> to vector<2x128xf32>
    %26 = vector.shape_cast %22 : vector<2x128xf32> to vector<1x2x128xf32>
    tpu.vector_store %arg14[%23, %c0_13, %c0_14], %26 {strides = array<i32>} : memref<8x2x128xf32, #tpu.memory_space<vmem>>, vector<1x2x128xf32>,
    %c7_i32 = arith.constant 7 : i32
    %27 = arith.cmpi eq, %arg0, %c7_i32 : i32
    %28 = arith.extui %27 : i1 to i32
    %c0_i32 = arith.constant 0 : i32
    %29 = arith.cmpi ne, %28, %c0_i32 : i32
    scf.if %29 {
      %c0_15 = arith.constant 0 : index
      %c0_16 = arith.constant 0 : index
      %c0_17 = arith.constant 0 : index
      %30 = vector.load %arg14[%c0_15, %c0_16, %c0_17] : memref<8x2x128xf32, #tpu.memory_space<vmem>>, vector<8x2x128xf32>
      %31 = vector.shape_cast %30 : vector<8x2x128xf32> to vector<16x128xf32>
      %c0_18 = arith.constant 0 : index
      %c0_19 = arith.constant 0 : index
      %32 = vector.load %arg5[%c0_18, %c0_19] : memref<128x128xbf16, #tpu.memory_space<vmem>>, vector<128x128xbf16>
      %c0_20 = arith.constant 0 : index
      %c0_21 = arith.constant 0 : index
      %33 = vector.load %arg6[%c0_20, %c0_21] : memref<32x128xbf16, #tpu.memory_space<vmem>>, vector<32x128xbf16>
      %c0_22 = arith.constant 0 : index
      %c0_23 = arith.constant 0 : index
      %34 = vector.load %arg7[%c0_22, %c0_23] : memref<1x128xf32, #tpu.memory_space<vmem>>, vector<1x128xf32>
      %35 = arith.truncf %31 : vector<16x128xf32> to vector<16x128xbf16>
      %cst_24 = arith.constant dense<0.000000e+00> : vector<16x128xf32>
      %36 = tpu.matmul %35, %32, %cst_24 {dimension_numbers = #tpu.dot_dimension_numbers<[1], [0], [0], [1], [0, 0, 1, 1], [], []>} : vector<16x128xbf16>, vector<128x128xbf16>, vector<16x128xf32> -> vector<16x128xf32>
      %37 = vector.broadcast %34 : vector<1x128xf32> to vector<16x128xf32>
      %38 = arith.addf %36, %37 : vector<16x128xf32>
      %cst_25 = arith.constant 0.000000e+00 : f32
      %39 = vector.broadcast %cst_25 : f32 to vector<2x32xf32>
      %cst_26 = arith.constant 0.000000e+00 : f32
      %40 = vector.broadcast %cst_26 : f32 to vector<2x32xf32>
      %41 = vector.extract_strided_slice %38 {offsets = [0, 0], sizes = [2, 128], strides = [1, 1]} : vector<16x128xf32> to vector<2x128xf32>
      %42 = arith.truncf %39 : vector<2x32xf32> to vector<2x32xbf16>
      %cst_27 = arith.constant dense<0.000000e+00> : vector<2x128xf32>
      %43 = tpu.matmul %42, %33, %cst_27 {dimension_numbers = #tpu.dot_dimension_numbers<[1], [0], [0], [1], [0, 0, 1, 1], [], []>} : vector<2x32xbf16>, vector<32x128xbf16>, vector<2x128xf32> -> vector<2x128xf32>
      %44 = arith.addf %41, %43 : vector<2x128xf32>
      %45 = arith.negf %44 : vector<2x128xf32>
      %46 = math.exp %45 : vector<2x128xf32>
      %cst_28 = arith.constant 1.000000e+00 : f32
      %47 = vector.broadcast %cst_28 : f32 to vector<2x128xf32>
      %48 = arith.addf %47, %46 : vector<2x128xf32>
      %49 = arith.divf %47, %48 : vector<2x128xf32>
      %50 = math.tanh %44 : vector<2x128xf32>
      %51 = vector.extract_strided_slice %49 {offsets = [0, 0], sizes = [2, 32], strides = [1, 1]} : vector<2x128xf32> to vector<2x32xf32>
      %52 = vector.extract_strided_slice %49 {offsets = [0, 32], sizes = [2, 32], strides = [1, 1]} : vector<2x128xf32> to vector<2x32xf32>
      %53 = vector.extract_strided_slice %50 {offsets = [0, 64], sizes = [2, 32], strides = [1, 1]} : vector<2x128xf32> to vector<2x32xf32>
      %54 = vector.extract_strided_slice %49 {offsets = [0, 96], sizes = [2, 32], strides = [1, 1]} : vector<2x128xf32> to vector<2x32xf32>
      %55 = arith.mulf %52, %40 : vector<2x32xf32>
      %56 = arith.mulf %51, %53 : vector<2x32xf32>
      %57 = arith.addf %55, %56 : vector<2x32xf32>
      %58 = math.tanh %57 : vector<2x32xf32>
      %59 = arith.mulf %54, %58 : vector<2x32xf32>
      %60 = vector.extract_strided_slice %38 {offsets = [2, 0], sizes = [2, 128], strides = [1, 1]} : vector<16x128xf32> to vector<2x128xf32>
      %61 = arith.truncf %59 : vector<2x32xf32> to vector<2x32xbf16>
      %cst_29 = arith.constant dense<0.000000e+00> : vector<2x128xf32>
      %62 = tpu.matmul %61, %33, %cst_29 {dimension_numbers = #tpu.dot_dimension_numbers<[1], [0], [0], [1], [0, 0, 1, 1], [], []>} : vector<2x32xbf16>, vector<32x128xbf16>, vector<2x128xf32> -> vector<2x128xf32>
      %63 = arith.addf %60, %62 : vector<2x128xf32>
      %64 = arith.negf %63 : vector<2x128xf32>
      %65 = math.exp %64 : vector<2x128xf32>
      %cst_30 = arith.constant 1.000000e+00 : f32
      %66 = vector.broadcast %cst_30 : f32 to vector<2x128xf32>
      %67 = arith.addf %66, %65 : vector<2x128xf32>
      %68 = arith.divf %66, %67 : vector<2x128xf32>
      %69 = math.tanh %63 : vector<2x128xf32>
      %70 = vector.extract_strided_slice %68 {offsets = [0, 0], sizes = [2, 32], strides = [1, 1]} : vector<2x128xf32> to vector<2x32xf32>
      %71 = vector.extract_strided_slice %68 {offsets = [0, 32], sizes = [2, 32], strides = [1, 1]} : vector<2x128xf32> to vector<2x32xf32>
      %72 = vector.extract_strided_slice %69 {offsets = [0, 64], sizes = [2, 32], strides = [1, 1]} : vector<2x128xf32> to vector<2x32xf32>
      %73 = vector.extract_strided_slice %68 {offsets = [0, 96], sizes = [2, 32], strides = [1, 1]} : vector<2x128xf32> to vector<2x32xf32>
      %74 = arith.mulf %71, %57 : vector<2x32xf32>
      %75 = arith.mulf %70, %72 : vector<2x32xf32>
      %76 = arith.addf %74, %75 : vector<2x32xf32>
      %77 = math.tanh %76 : vector<2x32xf32>
      %78 = arith.mulf %73, %77 : vector<2x32xf32>
      %79 = vector.extract_strided_slice %38 {offsets = [4, 0], sizes = [2, 128], strides = [1, 1]} : vector<16x128xf32> to vector<2x128xf32>
      %80 = arith.truncf %78 : vector<2x32xf32> to vector<2x32xbf16>
      %cst_31 = arith.constant dense<0.000000e+00> : vector<2x128xf32>
      %81 = tpu.matmul %80, %33, %cst_31 {dimension_numbers = #tpu.dot_dimension_numbers<[1], [0], [0], [1], [0, 0, 1, 1], [], []>} : vector<2x32xbf16>, vector<32x128xbf16>, vector<2x128xf32> -> vector<2x128xf32>
      %82 = arith.addf %79, %81 : vector<2x128xf32>
      %83 = arith.negf %82 : vector<2x128xf32>
      %84 = math.exp %83 : vector<2x128xf32>
      %cst_32 = arith.constant 1.000000e+00 : f32
      %85 = vector.broadcast %cst_32 : f32 to vector<2x128xf32>
      %86 = arith.addf %85, %84 : vector<2x128xf32>
      %87 = arith.divf %85, %86 : vector<2x128xf32>
      %88 = math.tanh %82 : vector<2x128xf32>
      %89 = vector.extract_strided_slice %87 {offsets = [0, 0], sizes = [2, 32], strides = [1, 1]} : vector<2x128xf32> to vector<2x32xf32>
      %90 = vector.extract_strided_slice %87 {offsets = [0, 32], sizes = [2, 32], strides = [1, 1]} : vector<2x128xf32> to vector<2x32xf32>
      %91 = vector.extract_strided_slice %88 {offsets = [0, 64], sizes = [2, 32], strides = [1, 1]} : vector<2x128xf32> to vector<2x32xf32>
      %92 = vector.extract_strided_slice %87 {offsets = [0, 96], sizes = [2, 32], strides = [1, 1]} : vector<2x128xf32> to vector<2x32xf32>
      %93 = arith.mulf %90, %76 : vector<2x32xf32>
      %94 = arith.mulf %89, %91 : vector<2x32xf32>
      %95 = arith.addf %93, %94 : vector<2x32xf32>
      %96 = math.tanh %95 : vector<2x32xf32>
      %97 = arith.mulf %92, %96 : vector<2x32xf32>
      %98 = vector.extract_strided_slice %38 {offsets = [6, 0], sizes = [2, 128], strides = [1, 1]} : vector<16x128xf32> to vector<2x128xf32>
      %99 = arith.truncf %97 : vector<2x32xf32> to vector<2x32xbf16>
      %cst_33 = arith.constant dense<0.000000e+00> : vector<2x128xf32>
      %100 = tpu.matmul %99, %33, %cst_33 {dimension_numbers = #tpu.dot_dimension_numbers<[1], [0], [0], [1], [0, 0, 1, 1], [], []>} : vector<2x32xbf16>, vector<32x128xbf16>, vector<2x128xf32> -> vector<2x128xf32>
      %101 = arith.addf %98, %100 : vector<2x128xf32>
      %102 = arith.negf %101 : vector<2x128xf32>
      %103 = math.exp %102 : vector<2x128xf32>
      %cst_34 = arith.constant 1.000000e+00 : f32
      %104 = vector.broadcast %cst_34 : f32 to vector<2x128xf32>
      %105 = arith.addf %104, %103 : vector<2x128xf32>
      %106 = arith.divf %104, %105 : vector<2x128xf32>
      %107 = math.tanh %101 : vector<2x128xf32>
      %108 = vector.extract_strided_slice %106 {offsets = [0, 0], sizes = [2, 32], strides = [1, 1]} : vector<2x128xf32> to vector<2x32xf32>
      %109 = vector.extract_strided_slice %106 {offsets = [0, 32], sizes = [2, 32], strides = [1, 1]} : vector<2x128xf32> to vector<2x32xf32>
      %110 = vector.extract_strided_slice %107 {offsets = [0, 64], sizes = [2, 32], strides = [1, 1]} : vector<2x128xf32> to vector<2x32xf32>
      %111 = vector.extract_strided_slice %106 {offsets = [0, 96], sizes = [2, 32], strides = [1, 1]} : vector<2x128xf32> to vector<2x32xf32>
      %112 = arith.mulf %109, %95 : vector<2x32xf32>
      %113 = arith.mulf %108, %110 : vector<2x32xf32>
      %114 = arith.addf %112, %113 : vector<2x32xf32>
      %115 = math.tanh %114 : vector<2x32xf32>
      %116 = arith.mulf %111, %115 : vector<2x32xf32>
      %117 = vector.extract_strided_slice %38 {offsets = [8, 0], sizes = [2, 128], strides = [1, 1]} : vector<16x128xf32> to vector<2x128xf32>
      %118 = arith.truncf %116 : vector<2x32xf32> to vector<2x32xbf16>
      %cst_35 = arith.constant dense<0.000000e+00> : vector<2x128xf32>
      %119 = tpu.matmul %118, %33, %cst_35 {dimension_numbers = #tpu.dot_dimension_numbers<[1], [0], [0], [1], [0, 0, 1, 1], [], []>} : vector<2x32xbf16>, vector<32x128xbf16>, vector<2x128xf32> -> vector<2x128xf32>
      %120 = arith.addf %117, %119 : vector<2x128xf32>
      %121 = arith.negf %120 : vector<2x128xf32>
      %122 = math.exp %121 : vector<2x128xf32>
      %cst_36 = arith.constant 1.000000e+00 : f32
      %123 = vector.broadcast %cst_36 : f32 to vector<2x128xf32>
      %124 = arith.addf %123, %122 : vector<2x128xf32>
      %125 = arith.divf %123, %124 : vector<2x128xf32>
      %126 = math.tanh %120 : vector<2x128xf32>
      %127 = vector.extract_strided_slice %125 {offsets = [0, 0], sizes = [2, 32], strides = [1, 1]} : vector<2x128xf32> to vector<2x32xf32>
      %128 = vector.extract_strided_slice %125 {offsets = [0, 32], sizes = [2, 32], strides = [1, 1]} : vector<2x128xf32> to vector<2x32xf32>
      %129 = vector.extract_strided_slice %126 {offsets = [0, 64], sizes = [2, 32], strides = [1, 1]} : vector<2x128xf32> to vector<2x32xf32>
      %130 = vector.extract_strided_slice %125 {offsets = [0, 96], sizes = [2, 32], strides = [1, 1]} : vector<2x128xf32> to vector<2x32xf32>
      %131 = arith.mulf %128, %114 : vector<2x32xf32>
      %132 = arith.mulf %127, %129 : vector<2x32xf32>
      %133 = arith.addf %131, %132 : vector<2x32xf32>
      %134 = math.tanh %133 : vector<2x32xf32>
      %135 = arith.mulf %130, %134 : vector<2x32xf32>
      %136 = vector.extract_strided_slice %38 {offsets = [10, 0], sizes = [2, 128], strides = [1, 1]} : vector<16x128xf32> to vector<2x128xf32>
      %137 = arith.truncf %135 : vector<2x32xf32> to vector<2x32xbf16>
      %cst_37 = arith.constant dense<0.000000e+00> : vector<2x128xf32>
      %138 = tpu.matmul %137, %33, %cst_37 {dimension_numbers = #tpu.dot_dimension_numbers<[1], [0], [0], [1], [0, 0, 1, 1], [], []>} : vector<2x32xbf16>, vector<32x128xbf16>, vector<2x128xf32> -> vector<2x128xf32>
      %139 = arith.addf %136, %138 : vector<2x128xf32>
      %140 = arith.negf %139 : vector<2x128xf32>
      %141 = math.exp %140 : vector<2x128xf32>
      %cst_38 = arith.constant 1.000000e+00 : f32
      %142 = vector.broadcast %cst_38 : f32 to vector<2x128xf32>
      %143 = arith.addf %142, %141 : vector<2x128xf32>
      %144 = arith.divf %142, %143 : vector<2x128xf32>
      %145 = math.tanh %139 : vector<2x128xf32>
      %146 = vector.extract_strided_slice %144 {offsets = [0, 0], sizes = [2, 32], strides = [1, 1]} : vector<2x128xf32> to vector<2x32xf32>
      %147 = vector.extract_strided_slice %144 {offsets = [0, 32], sizes = [2, 32], strides = [1, 1]} : vector<2x128xf32> to vector<2x32xf32>
      %148 = vector.extract_strided_slice %145 {offsets = [0, 64], sizes = [2, 32], strides = [1, 1]} : vector<2x128xf32> to vector<2x32xf32>
      %149 = vector.extract_strided_slice %144 {offsets = [0, 96], sizes = [2, 32], strides = [1, 1]} : vector<2x128xf32> to vector<2x32xf32>
      %150 = arith.mulf %147, %133 : vector<2x32xf32>
      %151 = arith.mulf %146, %148 : vector<2x32xf32>
      %152 = arith.addf %150, %151 : vector<2x32xf32>
      %153 = math.tanh %152 : vector<2x32xf32>
      %154 = arith.mulf %149, %153 : vector<2x32xf32>
      %155 = vector.extract_strided_slice %38 {offsets = [12, 0], sizes = [2, 128], strides = [1, 1]} : vector<16x128xf32> to vector<2x128xf32>
      %156 = arith.truncf %154 : vector<2x32xf32> to vector<2x32xbf16>
      %cst_39 = arith.constant dense<0.000000e+00> : vector<2x128xf32>
      %157 = tpu.matmul %156, %33, %cst_39 {dimension_numbers = #tpu.dot_dimension_numbers<[1], [0], [0], [1], [0, 0, 1, 1], [], []>} : vector<2x32xbf16>, vector<32x128xbf16>, vector<2x128xf32> -> vector<2x128xf32>
      %158 = arith.addf %155, %157 : vector<2x128xf32>
      %159 = arith.negf %158 : vector<2x128xf32>
      %160 = math.exp %159 : vector<2x128xf32>
      %cst_40 = arith.constant 1.000000e+00 : f32
      %161 = vector.broadcast %cst_40 : f32 to vector<2x128xf32>
      %162 = arith.addf %161, %160 : vector<2x128xf32>
      %163 = arith.divf %161, %162 : vector<2x128xf32>
      %164 = math.tanh %158 : vector<2x128xf32>
      %165 = vector.extract_strided_slice %163 {offsets = [0, 0], sizes = [2, 32], strides = [1, 1]} : vector<2x128xf32> to vector<2x32xf32>
      %166 = vector.extract_strided_slice %163 {offsets = [0, 32], sizes = [2, 32], strides = [1, 1]} : vector<2x128xf32> to vector<2x32xf32>
      %167 = vector.extract_strided_slice %164 {offsets = [0, 64], sizes = [2, 32], strides = [1, 1]} : vector<2x128xf32> to vector<2x32xf32>
      %168 = vector.extract_strided_slice %163 {offsets = [0, 96], sizes = [2, 32], strides = [1, 1]} : vector<2x128xf32> to vector<2x32xf32>
      %169 = arith.mulf %166, %152 : vector<2x32xf32>
      %170 = arith.mulf %165, %167 : vector<2x32xf32>
      %171 = arith.addf %169, %170 : vector<2x32xf32>
      %172 = math.tanh %171 : vector<2x32xf32>
      %173 = arith.mulf %168, %172 : vector<2x32xf32>
      %174 = vector.extract_strided_slice %38 {offsets = [14, 0], sizes = [2, 128], strides = [1, 1]} : vector<16x128xf32> to vector<2x128xf32>
      %175 = arith.truncf %173 : vector<2x32xf32> to vector<2x32xbf16>
      %cst_41 = arith.constant dense<0.000000e+00> : vector<2x128xf32>
      %176 = tpu.matmul %175, %33, %cst_41 {dimension_numbers = #tpu.dot_dimension_numbers<[1], [0], [0], [1], [0, 0, 1, 1], [], []>} : vector<2x32xbf16>, vector<32x128xbf16>, vector<2x128xf32> -> vector<2x128xf32>
      %177 = arith.addf %174, %176 : vector<2x128xf32>
      %178 = arith.negf %177 : vector<2x128xf32>
      %179 = math.exp %178 : vector<2x128xf32>
      %cst_42 = arith.constant 1.000000e+00 : f32
      %180 = vector.broadcast %cst_42 : f32 to vector<2x128xf32>
      %181 = arith.addf %180, %179 : vector<2x128xf32>
      %182 = arith.divf %180, %181 : vector<2x128xf32>
      %183 = math.tanh %177 : vector<2x128xf32>
      %184 = vector.extract_strided_slice %182 {offsets = [0, 0], sizes = [2, 32], strides = [1, 1]} : vector<2x128xf32> to vector<2x32xf32>
      %185 = vector.extract_strided_slice %182 {offsets = [0, 32], sizes = [2, 32], strides = [1, 1]} : vector<2x128xf32> to vector<2x32xf32>
      %186 = vector.extract_strided_slice %183 {offsets = [0, 64], sizes = [2, 32], strides = [1, 1]} : vector<2x128xf32> to vector<2x32xf32>
      %187 = vector.extract_strided_slice %182 {offsets = [0, 96], sizes = [2, 32], strides = [1, 1]} : vector<2x128xf32> to vector<2x32xf32>
      %188 = arith.mulf %185, %171 : vector<2x32xf32>
      %189 = arith.mulf %184, %186 : vector<2x32xf32>
      %190 = arith.addf %188, %189 : vector<2x32xf32>
      %191 = math.tanh %190 : vector<2x32xf32>
      %192 = arith.mulf %187, %191 : vector<2x32xf32>
      %193 = tpu.concatenate %59, %78, %97, %116, %135, %154, %173, %192 in 0 : vector<2x32xf32>, vector<2x32xf32>, vector<2x32xf32>, vector<2x32xf32>, vector<2x32xf32>, vector<2x32xf32>, vector<2x32xf32>, vector<2x32xf32> -> vector<16x32xf32>
      %c0_43 = arith.constant 0 : index
      %c0_44 = arith.constant 0 : index
      %194 = vector.load %arg8[%c0_43, %c0_44] : memref<32x128xbf16, #tpu.memory_space<vmem>>, vector<32x128xbf16>
      %c0_45 = arith.constant 0 : index
      %c0_46 = arith.constant 0 : index
      %195 = vector.load %arg9[%c0_45, %c0_46] : memref<32x128xbf16, #tpu.memory_space<vmem>>, vector<32x128xbf16>
      %c0_47 = arith.constant 0 : index
      %c0_48 = arith.constant 0 : index
      %196 = vector.load %arg10[%c0_47, %c0_48] : memref<1x128xf32, #tpu.memory_space<vmem>>, vector<1x128xf32>
      %197 = arith.truncf %193 : vector<16x32xf32> to vector<16x32xbf16>
      %cst_49 = arith.constant dense<0.000000e+00> : vector<16x128xf32>
      %198 = tpu.matmul %197, %194, %cst_49 {dimension_numbers = #tpu.dot_dimension_numbers<[1], [0], [0], [1], [0, 0, 1, 1], [], []>} : vector<16x32xbf16>, vector<32x128xbf16>, vector<16x128xf32> -> vector<16x128xf32>
      %199 = vector.broadcast %196 : vector<1x128xf32> to vector<16x128xf32>
      %200 = arith.addf %198, %199 : vector<16x128xf32>
      %cst_50 = arith.constant 0.000000e+00 : f32
      %201 = vector.broadcast %cst_50 : f32 to vector<2x32xf32>
      %cst_51 = arith.constant 0.000000e+00 : f32
      %202 = vector.broadcast %cst_51 : f32 to vector<2x32xf32>
      %203 = vector.extract_strided_slice %200 {offsets = [0, 0], sizes = [2, 128], strides = [1, 1]} : vector<16x128xf32> to vector<2x128xf32>
      %204 = arith.truncf %201 : vector<2x32xf32> to vector<2x32xbf16>
      %cst_52 = arith.constant dense<0.000000e+00> : vector<2x128xf32>
      %205 = tpu.matmul %204, %195, %cst_52 {dimension_numbers = #tpu.dot_dimension_numbers<[1], [0], [0], [1], [0, 0, 1, 1], [], []>} : vector<2x32xbf16>, vector<32x128xbf16>, vector<2x128xf32> -> vector<2x128xf32>
      %206 = arith.addf %203, %205 : vector<2x128xf32>
      %207 = arith.negf %206 : vector<2x128xf32>
      %208 = math.exp %207 : vector<2x128xf32>
      %cst_53 = arith.constant 1.000000e+00 : f32
      %209 = vector.broadcast %cst_53 : f32 to vector<2x128xf32>
      %210 = arith.addf %209, %208 : vector<2x128xf32>
      %211 = arith.divf %209, %210 : vector<2x128xf32>
      %212 = math.tanh %206 : vector<2x128xf32>
      %213 = vector.extract_strided_slice %211 {offsets = [0, 0], sizes = [2, 32], strides = [1, 1]} : vector<2x128xf32> to vector<2x32xf32>
      %214 = vector.extract_strided_slice %211 {offsets = [0, 32], sizes = [2, 32], strides = [1, 1]} : vector<2x128xf32> to vector<2x32xf32>
      %215 = vector.extract_strided_slice %212 {offsets = [0, 64], sizes = [2, 32], strides = [1, 1]} : vector<2x128xf32> to vector<2x32xf32>
      %216 = vector.extract_strided_slice %211 {offsets = [0, 96], sizes = [2, 32], strides = [1, 1]} : vector<2x128xf32> to vector<2x32xf32>
      %217 = arith.mulf %214, %202 : vector<2x32xf32>
      %218 = arith.mulf %213, %215 : vector<2x32xf32>
      %219 = arith.addf %217, %218 : vector<2x32xf32>
      %220 = math.tanh %219 : vector<2x32xf32>
      %221 = arith.mulf %216, %220 : vector<2x32xf32>
      %222 = vector.extract_strided_slice %200 {offsets = [2, 0], sizes = [2, 128], strides = [1, 1]} : vector<16x128xf32> to vector<2x128xf32>
      %223 = arith.truncf %221 : vector<2x32xf32> to vector<2x32xbf16>
      %cst_54 = arith.constant dense<0.000000e+00> : vector<2x128xf32>
      %224 = tpu.matmul %223, %195, %cst_54 {dimension_numbers = #tpu.dot_dimension_numbers<[1], [0], [0], [1], [0, 0, 1, 1], [], []>} : vector<2x32xbf16>, vector<32x128xbf16>, vector<2x128xf32> -> vector<2x128xf32>
      %225 = arith.addf %222, %224 : vector<2x128xf32>
      %226 = arith.negf %225 : vector<2x128xf32>
      %227 = math.exp %226 : vector<2x128xf32>
      %cst_55 = arith.constant 1.000000e+00 : f32
      %228 = vector.broadcast %cst_55 : f32 to vector<2x128xf32>
      %229 = arith.addf %228, %227 : vector<2x128xf32>
      %230 = arith.divf %228, %229 : vector<2x128xf32>
      %231 = math.tanh %225 : vector<2x128xf32>
      %232 = vector.extract_strided_slice %230 {offsets = [0, 0], sizes = [2, 32], strides = [1, 1]} : vector<2x128xf32> to vector<2x32xf32>
      %233 = vector.extract_strided_slice %230 {offsets = [0, 32], sizes = [2, 32], strides = [1, 1]} : vector<2x128xf32> to vector<2x32xf32>
      %234 = vector.extract_strided_slice %231 {offsets = [0, 64], sizes = [2, 32], strides = [1, 1]} : vector<2x128xf32> to vector<2x32xf32>
      %235 = vector.extract_strided_slice %230 {offsets = [0, 96], sizes = [2, 32], strides = [1, 1]} : vector<2x128xf32> to vector<2x32xf32>
      %236 = arith.mulf %233, %219 : vector<2x32xf32>
      %237 = arith.mulf %232, %234 : vector<2x32xf32>
      %238 = arith.addf %236, %237 : vector<2x32xf32>
      %239 = math.tanh %238 : vector<2x32xf32>
      %240 = arith.mulf %235, %239 : vector<2x32xf32>
      %241 = vector.extract_strided_slice %200 {offsets = [4, 0], sizes = [2, 128], strides = [1, 1]} : vector<16x128xf32> to vector<2x128xf32>
      %242 = arith.truncf %240 : vector<2x32xf32> to vector<2x32xbf16>
      %cst_56 = arith.constant dense<0.000000e+00> : vector<2x128xf32>
      %243 = tpu.matmul %242, %195, %cst_56 {dimension_numbers = #tpu.dot_dimension_numbers<[1], [0], [0], [1], [0, 0, 1, 1], [], []>} : vector<2x32xbf16>, vector<32x128xbf16>, vector<2x128xf32> -> vector<2x128xf32>
      %244 = arith.addf %241, %243 : vector<2x128xf32>
      %245 = arith.negf %244 : vector<2x128xf32>
      %246 = math.exp %245 : vector<2x128xf32>
      %cst_57 = arith.constant 1.000000e+00 : f32
      %247 = vector.broadcast %cst_57 : f32 to vector<2x128xf32>
      %248 = arith.addf %247, %246 : vector<2x128xf32>
      %249 = arith.divf %247, %248 : vector<2x128xf32>
      %250 = math.tanh %244 : vector<2x128xf32>
      %251 = vector.extract_strided_slice %249 {offsets = [0, 0], sizes = [2, 32], strides = [1, 1]} : vector<2x128xf32> to vector<2x32xf32>
      %252 = vector.extract_strided_slice %249 {offsets = [0, 32], sizes = [2, 32], strides = [1, 1]} : vector<2x128xf32> to vector<2x32xf32>
      %253 = vector.extract_strided_slice %250 {offsets = [0, 64], sizes = [2, 32], strides = [1, 1]} : vector<2x128xf32> to vector<2x32xf32>
      %254 = vector.extract_strided_slice %249 {offsets = [0, 96], sizes = [2, 32], strides = [1, 1]} : vector<2x128xf32> to vector<2x32xf32>
      %255 = arith.mulf %252, %238 : vector<2x32xf32>
      %256 = arith.mulf %251, %253 : vector<2x32xf32>
      %257 = arith.addf %255, %256 : vector<2x32xf32>
      %258 = math.tanh %257 : vector<2x32xf32>
      %259 = arith.mulf %254, %258 : vector<2x32xf32>
      %260 = vector.extract_strided_slice %200 {offsets = [6, 0], sizes = [2, 128], strides = [1, 1]} : vector<16x128xf32> to vector<2x128xf32>
      %261 = arith.truncf %259 : vector<2x32xf32> to vector<2x32xbf16>
      %cst_58 = arith.constant dense<0.000000e+00> : vector<2x128xf32>
      %262 = tpu.matmul %261, %195, %cst_58 {dimension_numbers = #tpu.dot_dimension_numbers<[1], [0], [0], [1], [0, 0, 1, 1], [], []>} : vector<2x32xbf16>, vector<32x128xbf16>, vector<2x128xf32> -> vector<2x128xf32>
      %263 = arith.addf %260, %262 : vector<2x128xf32>
      %264 = arith.negf %263 : vector<2x128xf32>
      %265 = math.exp %264 : vector<2x128xf32>
      %cst_59 = arith.constant 1.000000e+00 : f32
      %266 = vector.broadcast %cst_59 : f32 to vector<2x128xf32>
      %267 = arith.addf %266, %265 : vector<2x128xf32>
      %268 = arith.divf %266, %267 : vector<2x128xf32>
      %269 = math.tanh %263 : vector<2x128xf32>
      %270 = vector.extract_strided_slice %268 {offsets = [0, 0], sizes = [2, 32], strides = [1, 1]} : vector<2x128xf32> to vector<2x32xf32>
      %271 = vector.extract_strided_slice %268 {offsets = [0, 32], sizes = [2, 32], strides = [1, 1]} : vector<2x128xf32> to vector<2x32xf32>
      %272 = vector.extract_strided_slice %269 {offsets = [0, 64], sizes = [2, 32], strides = [1, 1]} : vector<2x128xf32> to vector<2x32xf32>
      %273 = vector.extract_strided_slice %268 {offsets = [0, 96], sizes = [2, 32], strides = [1, 1]} : vector<2x128xf32> to vector<2x32xf32>
      %274 = arith.mulf %271, %257 : vector<2x32xf32>
      %275 = arith.mulf %270, %272 : vector<2x32xf32>
      %276 = arith.addf %274, %275 : vector<2x32xf32>
      %277 = math.tanh %276 : vector<2x32xf32>
      %278 = arith.mulf %273, %277 : vector<2x32xf32>
      %279 = vector.extract_strided_slice %200 {offsets = [8, 0], sizes = [2, 128], strides = [1, 1]} : vector<16x128xf32> to vector<2x128xf32>
      %280 = arith.truncf %278 : vector<2x32xf32> to vector<2x32xbf16>
      %cst_60 = arith.constant dense<0.000000e+00> : vector<2x128xf32>
      %281 = tpu.matmul %280, %195, %cst_60 {dimension_numbers = #tpu.dot_dimension_numbers<[1], [0], [0], [1], [0, 0, 1, 1], [], []>} : vector<2x32xbf16>, vector<32x128xbf16>, vector<2x128xf32> -> vector<2x128xf32>
      %282 = arith.addf %279, %281 : vector<2x128xf32>
      %283 = arith.negf %282 : vector<2x128xf32>
      %284 = math.exp %283 : vector<2x128xf32>
      %cst_61 = arith.constant 1.000000e+00 : f32
      %285 = vector.broadcast %cst_61 : f32 to vector<2x128xf32>
      %286 = arith.addf %285, %284 : vector<2x128xf32>
      %287 = arith.divf %285, %286 : vector<2x128xf32>
      %288 = math.tanh %282 : vector<2x128xf32>
      %289 = vector.extract_strided_slice %287 {offsets = [0, 0], sizes = [2, 32], strides = [1, 1]} : vector<2x128xf32> to vector<2x32xf32>
      %290 = vector.extract_strided_slice %287 {offsets = [0, 32], sizes = [2, 32], strides = [1, 1]} : vector<2x128xf32> to vector<2x32xf32>
      %291 = vector.extract_strided_slice %288 {offsets = [0, 64], sizes = [2, 32], strides = [1, 1]} : vector<2x128xf32> to vector<2x32xf32>
      %292 = vector.extract_strided_slice %287 {offsets = [0, 96], sizes = [2, 32], strides = [1, 1]} : vector<2x128xf32> to vector<2x32xf32>
      %293 = arith.mulf %290, %276 : vector<2x32xf32>
      %294 = arith.mulf %289, %291 : vector<2x32xf32>
      %295 = arith.addf %293, %294 : vector<2x32xf32>
      %296 = math.tanh %295 : vector<2x32xf32>
      %297 = arith.mulf %292, %296 : vector<2x32xf32>
      %298 = vector.extract_strided_slice %200 {offsets = [10, 0], sizes = [2, 128], strides = [1, 1]} : vector<16x128xf32> to vector<2x128xf32>
      %299 = arith.truncf %297 : vector<2x32xf32> to vector<2x32xbf16>
      %cst_62 = arith.constant dense<0.000000e+00> : vector<2x128xf32>
      %300 = tpu.matmul %299, %195, %cst_62 {dimension_numbers = #tpu.dot_dimension_numbers<[1], [0], [0], [1], [0, 0, 1, 1], [], []>} : vector<2x32xbf16>, vector<32x128xbf16>, vector<2x128xf32> -> vector<2x128xf32>
      %301 = arith.addf %298, %300 : vector<2x128xf32>
      %302 = arith.negf %301 : vector<2x128xf32>
      %303 = math.exp %302 : vector<2x128xf32>
      %cst_63 = arith.constant 1.000000e+00 : f32
      %304 = vector.broadcast %cst_63 : f32 to vector<2x128xf32>
      %305 = arith.addf %304, %303 : vector<2x128xf32>
      %306 = arith.divf %304, %305 : vector<2x128xf32>
      %307 = math.tanh %301 : vector<2x128xf32>
      %308 = vector.extract_strided_slice %306 {offsets = [0, 0], sizes = [2, 32], strides = [1, 1]} : vector<2x128xf32> to vector<2x32xf32>
      %309 = vector.extract_strided_slice %306 {offsets = [0, 32], sizes = [2, 32], strides = [1, 1]} : vector<2x128xf32> to vector<2x32xf32>
      %310 = vector.extract_strided_slice %307 {offsets = [0, 64], sizes = [2, 32], strides = [1, 1]} : vector<2x128xf32> to vector<2x32xf32>
      %311 = vector.extract_strided_slice %306 {offsets = [0, 96], sizes = [2, 32], strides = [1, 1]} : vector<2x128xf32> to vector<2x32xf32>
      %312 = arith.mulf %309, %295 : vector<2x32xf32>
      %313 = arith.mulf %308, %310 : vector<2x32xf32>
      %314 = arith.addf %312, %313 : vector<2x32xf32>
      %315 = math.tanh %314 : vector<2x32xf32>
      %316 = arith.mulf %311, %315 : vector<2x32xf32>
      %317 = vector.extract_strided_slice %200 {offsets = [12, 0], sizes = [2, 128], strides = [1, 1]} : vector<16x128xf32> to vector<2x128xf32>
      %318 = arith.truncf %316 : vector<2x32xf32> to vector<2x32xbf16>
      %cst_64 = arith.constant dense<0.000000e+00> : vector<2x128xf32>
      %319 = tpu.matmul %318, %195, %cst_64 {dimension_numbers = #tpu.dot_dimension_numbers<[1], [0], [0], [1], [0, 0, 1, 1], [], []>} : vector<2x32xbf16>, vector<32x128xbf16>, vector<2x128xf32> -> vector<2x128xf32>
      %320 = arith.addf %317, %319 : vector<2x128xf32>
      %321 = arith.negf %320 : vector<2x128xf32>
      %322 = math.exp %321 : vector<2x128xf32>
      %cst_65 = arith.constant 1.000000e+00 : f32
      %323 = vector.broadcast %cst_65 : f32 to vector<2x128xf32>
      %324 = arith.addf %323, %322 : vector<2x128xf32>
      %325 = arith.divf %323, %324 : vector<2x128xf32>
      %326 = math.tanh %320 : vector<2x128xf32>
      %327 = vector.extract_strided_slice %325 {offsets = [0, 0], sizes = [2, 32], strides = [1, 1]} : vector<2x128xf32> to vector<2x32xf32>
      %328 = vector.extract_strided_slice %325 {offsets = [0, 32], sizes = [2, 32], strides = [1, 1]} : vector<2x128xf32> to vector<2x32xf32>
      %329 = vector.extract_strided_slice %326 {offsets = [0, 64], sizes = [2, 32], strides = [1, 1]} : vector<2x128xf32> to vector<2x32xf32>
      %330 = vector.extract_strided_slice %325 {offsets = [0, 96], sizes = [2, 32], strides = [1, 1]} : vector<2x128xf32> to vector<2x32xf32>
      %331 = arith.mulf %328, %314 : vector<2x32xf32>
      %332 = arith.mulf %327, %329 : vector<2x32xf32>
      %333 = arith.addf %331, %332 : vector<2x32xf32>
      %334 = math.tanh %333 : vector<2x32xf32>
      %335 = arith.mulf %330, %334 : vector<2x32xf32>
      %336 = vector.extract_strided_slice %200 {offsets = [14, 0], sizes = [2, 128], strides = [1, 1]} : vector<16x128xf32> to vector<2x128xf32>
      %337 = arith.truncf %335 : vector<2x32xf32> to vector<2x32xbf16>
      %cst_66 = arith.constant dense<0.000000e+00> : vector<2x128xf32>
      %338 = tpu.matmul %337, %195, %cst_66 {dimension_numbers = #tpu.dot_dimension_numbers<[1], [0], [0], [1], [0, 0, 1, 1], [], []>} : vector<2x32xbf16>, vector<32x128xbf16>, vector<2x128xf32> -> vector<2x128xf32>
      %339 = arith.addf %336, %338 : vector<2x128xf32>
      %340 = arith.negf %339 : vector<2x128xf32>
      %341 = math.exp %340 : vector<2x128xf32>
      %cst_67 = arith.constant 1.000000e+00 : f32
      %342 = vector.broadcast %cst_67 : f32 to vector<2x128xf32>
      %343 = arith.addf %342, %341 : vector<2x128xf32>
      %344 = arith.divf %342, %343 : vector<2x128xf32>
      %345 = math.tanh %339 : vector<2x128xf32>
      %346 = vector.extract_strided_slice %344 {offsets = [0, 0], sizes = [2, 32], strides = [1, 1]} : vector<2x128xf32> to vector<2x32xf32>
      %347 = vector.extract_strided_slice %344 {offsets = [0, 32], sizes = [2, 32], strides = [1, 1]} : vector<2x128xf32> to vector<2x32xf32>
      %348 = vector.extract_strided_slice %345 {offsets = [0, 64], sizes = [2, 32], strides = [1, 1]} : vector<2x128xf32> to vector<2x32xf32>
      %349 = vector.extract_strided_slice %344 {offsets = [0, 96], sizes = [2, 32], strides = [1, 1]} : vector<2x128xf32> to vector<2x32xf32>
      %350 = arith.mulf %347, %333 : vector<2x32xf32>
      %351 = arith.mulf %346, %348 : vector<2x32xf32>
      %352 = arith.addf %350, %351 : vector<2x32xf32>
      %353 = math.tanh %352 : vector<2x32xf32>
      %354 = arith.mulf %349, %353 : vector<2x32xf32>
      %c0_68 = arith.constant 0 : index
      %355 = memref.load %arg1[%c0_68] : memref<2xi32, #tpu.memory_space<smem>>
      %356 = vector.extract_strided_slice %221 {offsets = [0, 0], sizes = [1, 32], strides = [1, 1]} : vector<2x32xf32> to vector<1x32xf32>
      %c1_i32 = arith.constant 1 : i32
      %357 = arith.cmpi eq, %355, %c1_i32 : i32
      %358 = vector.extract_strided_slice %240 {offsets = [0, 0], sizes = [1, 32], strides = [1, 1]} : vector<2x32xf32> to vector<1x32xf32>
      %359 = arith.select %357, %358, %356 : vector<1x32xf32>
      %c2_i32 = arith.constant 2 : i32
      %360 = arith.cmpi eq, %355, %c2_i32 : i32
      %361 = vector.extract_strided_slice %259 {offsets = [0, 0], sizes = [1, 32], strides = [1, 1]} : vector<2x32xf32> to vector<1x32xf32>
      %362 = arith.select %360, %361, %359 : vector<1x32xf32>
      %c3_i32 = arith.constant 3 : i32
      %363 = arith.cmpi eq, %355, %c3_i32 : i32
      %364 = vector.extract_strided_slice %278 {offsets = [0, 0], sizes = [1, 32], strides = [1, 1]} : vector<2x32xf32> to vector<1x32xf32>
      %365 = arith.select %363, %364, %362 : vector<1x32xf32>
      %c4_i32 = arith.constant 4 : i32
      %366 = arith.cmpi eq, %355, %c4_i32 : i32
      %367 = vector.extract_strided_slice %297 {offsets = [0, 0], sizes = [1, 32], strides = [1, 1]} : vector<2x32xf32> to vector<1x32xf32>
      %368 = arith.select %366, %367, %365 : vector<1x32xf32>
      %c5_i32 = arith.constant 5 : i32
      %369 = arith.cmpi eq, %355, %c5_i32 : i32
      %370 = vector.extract_strided_slice %316 {offsets = [0, 0], sizes = [1, 32], strides = [1, 1]} : vector<2x32xf32> to vector<1x32xf32>
      %371 = arith.select %369, %370, %368 : vector<1x32xf32>
      %c6_i32 = arith.constant 6 : i32
      %372 = arith.cmpi eq, %355, %c6_i32 : i32
      %373 = vector.extract_strided_slice %335 {offsets = [0, 0], sizes = [1, 32], strides = [1, 1]} : vector<2x32xf32> to vector<1x32xf32>
      %374 = arith.select %372, %373, %371 : vector<1x32xf32>
      %c7_i32_69 = arith.constant 7 : i32
      %375 = arith.cmpi eq, %355, %c7_i32_69 : i32
      %376 = vector.extract_strided_slice %354 {offsets = [0, 0], sizes = [1, 32], strides = [1, 1]} : vector<2x32xf32> to vector<1x32xf32>
      %377 = arith.select %375, %376, %374 : vector<1x32xf32>
      %c1 = arith.constant 1 : index
      %378 = memref.load %arg1[%c1] : memref<2xi32, #tpu.memory_space<smem>>
      %379 = vector.extract_strided_slice %221 {offsets = [1, 0], sizes = [1, 32], strides = [1, 1]} : vector<2x32xf32> to vector<1x32xf32>
      %c1_i32_70 = arith.constant 1 : i32
      %380 = arith.cmpi eq, %378, %c1_i32_70 : i32
      %381 = vector.extract_strided_slice %240 {offsets = [1, 0], sizes = [1, 32], strides = [1, 1]} : vector<2x32xf32> to vector<1x32xf32>
      %382 = arith.select %380, %381, %379 : vector<1x32xf32>
      %c2_i32_71 = arith.constant 2 : i32
      %383 = arith.cmpi eq, %378, %c2_i32_71 : i32
      %384 = vector.extract_strided_slice %259 {offsets = [1, 0], sizes = [1, 32], strides = [1, 1]} : vector<2x32xf32> to vector<1x32xf32>
      %385 = arith.select %383, %384, %382 : vector<1x32xf32>
      %c3_i32_72 = arith.constant 3 : i32
      %386 = arith.cmpi eq, %378, %c3_i32_72 : i32
      %387 = vector.extract_strided_slice %278 {offsets = [1, 0], sizes = [1, 32], strides = [1, 1]} : vector<2x32xf32> to vector<1x32xf32>
      %388 = arith.select %386, %387, %385 : vector<1x32xf32>
      %c4_i32_73 = arith.constant 4 : i32
      %389 = arith.cmpi eq, %378, %c4_i32_73 : i32
      %390 = vector.extract_strided_slice %297 {offsets = [1, 0], sizes = [1, 32], strides = [1, 1]} : vector<2x32xf32> to vector<1x32xf32>
      %391 = arith.select %389, %390, %388 : vector<1x32xf32>
      %c5_i32_74 = arith.constant 5 : i32
      %392 = arith.cmpi eq, %378, %c5_i32_74 : i32
      %393 = vector.extract_strided_slice %316 {offsets = [1, 0], sizes = [1, 32], strides = [1, 1]} : vector<2x32xf32> to vector<1x32xf32>
      %394 = arith.select %392, %393, %391 : vector<1x32xf32>
      %c6_i32_75 = arith.constant 6 : i32
      %395 = arith.cmpi eq, %378, %c6_i32_75 : i32
      %396 = vector.extract_strided_slice %335 {offsets = [1, 0], sizes = [1, 32], strides = [1, 1]} : vector<2x32xf32> to vector<1x32xf32>
      %397 = arith.select %395, %396, %394 : vector<1x32xf32>
      %c7_i32_76 = arith.constant 7 : i32
      %398 = arith.cmpi eq, %378, %c7_i32_76 : i32
      %399 = vector.extract_strided_slice %354 {offsets = [1, 0], sizes = [1, 32], strides = [1, 1]} : vector<2x32xf32> to vector<1x32xf32>
      %400 = arith.select %398, %399, %397 : vector<1x32xf32>
      %401 = tpu.concatenate %377, %400 in 0 : vector<1x32xf32>, vector<1x32xf32> -> vector<2x32xf32>
      %402 = arith.truncf %401 : vector<2x32xf32> to vector<2x32xbf16>
      %c0_77 = arith.constant 0 : index
      %c0_78 = arith.constant 0 : index
      %403 = vector.load %arg11[%c0_77, %c0_78] : memref<32x8xbf16, #tpu.memory_space<vmem>>, vector<32x8xbf16>
      %cst_79 = arith.constant dense<0.000000e+00> : vector<2x8xf32>
      %404 = tpu.matmul %402, %403, %cst_79 {dimension_numbers = #tpu.dot_dimension_numbers<[1], [0], [0], [1], [0, 0, 1, 1], [], []>} : vector<2x32xbf16>, vector<32x8xbf16>, vector<2x8xf32> -> vector<2x8xf32>
      %c0_80 = arith.constant 0 : index
      %c0_81 = arith.constant 0 : index
      %405 = vector.load %arg12[%c0_80, %c0_81] : memref<1x8xf32, #tpu.memory_space<vmem>>, vector<1x8xf32>
      %406 = vector.broadcast %405 : vector<1x8xf32> to vector<2x8xf32>
      %407 = arith.addf %404, %406 : vector<2x8xf32>
      %c0_82 = arith.constant 0 : index
      %c0_83 = arith.constant 0 : index
      %408 = vector.load %arg13[%c0_82, %c0_83] : memref<2x8xf32, #tpu.memory_space<vmem>>, vector<2x8xf32>
      tpu.vector_store %arg13[%c0_82, %c0_83], %407 {strides = array<i32>} : memref<2x8xf32, #tpu.memory_space<vmem>>, vector<2x8xf32>,
    } else {
    }
    return
  }
  func.func @transform_0(%arg0: i32, %arg1: memref<2xi32, #tpu.memory_space<smem>>) -> (i32, i32) {
    %c0_i32 = arith.constant 0 : i32
    %c0_i32_0 = arith.constant 0 : i32
    return %arg0, %c0_i32 : i32, i32
  }
  func.func @transform_1(%arg0: i32, %arg1: memref<2xi32, #tpu.memory_space<smem>>) -> (i32, i32) {
    %c0_i32 = arith.constant 0 : i32
    %c0_i32_0 = arith.constant 0 : i32
    %c0_i32_1 = arith.constant 0 : i32
    return %c0_i32, %c0_i32_0 : i32, i32
  }
  func.func @transform_2(%arg0: i32, %arg1: memref<2xi32, #tpu.memory_space<smem>>) -> (i32, i32) {
    %c0_i32 = arith.constant 0 : i32
    %c0_i32_0 = arith.constant 0 : i32
    %c0_i32_1 = arith.constant 0 : i32
    return %c0_i32, %c0_i32_0 : i32, i32
  }
  func.func @transform_3(%arg0: i32, %arg1: memref<2xi32, #tpu.memory_space<smem>>) -> (i32, i32) {
    %c0_i32 = arith.constant 0 : i32
    %c0_i32_0 = arith.constant 0 : i32
    %c0_i32_1 = arith.constant 0 : i32
    return %c0_i32, %c0_i32_0 : i32, i32
  }
  func.func @transform_4(%arg0: i32, %arg1: memref<2xi32, #tpu.memory_space<smem>>) -> (i32, i32) {
    %c0_i32 = arith.constant 0 : i32
    %c0_i32_0 = arith.constant 0 : i32
    %c0_i32_1 = arith.constant 0 : i32
    return %c0_i32, %c0_i32_0 : i32, i32
  }
  func.func @transform_5(%arg0: i32, %arg1: memref<2xi32, #tpu.memory_space<smem>>) -> (i32, i32) {
    %c0_i32 = arith.constant 0 : i32
    %c0_i32_0 = arith.constant 0 : i32
    %c0_i32_1 = arith.constant 0 : i32
    return %c0_i32, %c0_i32_0 : i32, i32
  }
  func.func @transform_6(%arg0: i32, %arg1: memref<2xi32, #tpu.memory_space<smem>>) -> (i32, i32) {
    %c0_i32 = arith.constant 0 : i32
    %c0_i32_0 = arith.constant 0 : i32
    %c0_i32_1 = arith.constant 0 : i32
    return %c0_i32, %c0_i32_0 : i32, i32
  }
  func.func @transform_7(%arg0: i32, %arg1: memref<2xi32, #tpu.memory_space<smem>>) -> (i32, i32) {
    %c0_i32 = arith.constant 0 : i32
    %c0_i32_0 = arith.constant 0 : i32
    %c0_i32_1 = arith.constant 0 : i32
    return %c0_i32, %c0_i32_0 : i32, i32
  }
  func.func @transform_8(%arg0: i32, %arg1: memref<2xi32, #tpu.memory_space<smem>>) -> (i32, i32) {
    %c0_i32 = arith.constant 0 : i32
    %c0_i32_0 = arith.constant 0 : i32
    %c0_i32_1 = arith.constant 0 : i32
    return %c0_i32, %c0_i32_0 : i32, i32
  }
  func.func @transform_9(%arg0: i32, %arg1: memref<2xi32, #tpu.memory_space<smem>>) -> (i32, i32) {
    %c0_i32 = arith.constant 0 : i32
    %c0_i32_0 = arith.constant 0 : i32
    %c0_i32_1 = arith.constant 0 : i32
    return %c0_i32, %c0_i32_0 : i32, i32
  }
  func.func @transform_10(%arg0: i32, %arg1: memref<2xi32, #tpu.memory_space<smem>>) -> (i32, i32) {
    %c0_i32 = arith.constant 0 : i32
    %c0_i32_0 = arith.constant 0 : i32
    %c0_i32_1 = arith.constant 0 : i32
    return %c0_i32, %c0_i32_0 : i32, i32
  }
  func.func @transform_11(%arg0: i32, %arg1: memref<2xi32, #tpu.memory_space<smem>>) -> (i32, i32) {
    %c0_i32 = arith.constant 0 : i32
    %c0_i32_0 = arith.constant 0 : i32
    %c0_i32_1 = arith.constant 0 : i32
    return %c0_i32, %c0_i32_0 : i32, i32
  }
}

</mosaic_0001>

<bundles_post_ra>
// kernel: cnn_lstm_forward.1
= control target key start
LH: loop header
LB: loop body
LE: loop exit
PB: predicated region body
PF: predicated region fallthrough
CT: control target
= control target key end

     0   :  { %s4231_s0 = inlined_call_operand.vmem [shape: s32[2], index: 0, kind: input, shape index: {}]   ;;  %s4232_s1 = inlined_call_operand.vmem [shape: bf16[4096,32], index: 1, kind: input, shape index: {}]   ;;  %s4233_s2 = inlined_call_operand.vmem [shape: bf16[32,128], index: 2, kind: input, shape index: {}]   ;;  %s4234_s3 = inlined_call_operand.vmem [shape: f32[1,128], index: 3, kind: input, shape index: {}]   ;;  %s4235_s4 = inlined_call_operand.vmem [shape: bf16[128,128], index: 4, kind: input, shape index: {}]   ;;  %s4236_s5 = inlined_call_operand.vmem [shape: bf16[32,128], index: 5, kind: input, shape index: {}]   ;;  %s4237_s6 = inlined_call_operand.vmem [shape: f32[1,128], index: 6, kind: input, shape index: {}]   ;;  %s4238_s7 = inlined_call_operand.vmem [shape: bf16[32,128], index: 7, kind: input, shape index: {}]   ;;  %s4239_s8 = inlined_call_operand.vmem [shape: bf16[32,128], index: 8, kind: input, shape index: {}]   ;;  %s4240_s9 = inlined_call_operand.vmem [shape: f32[1,128], index: 9, kind: input, shape index: {}]   ;;  %s4241_s10 = inlined_call_operand.vmem [shape: bf16[32,8], index: 10, kind: input, shape index: {}]   ;;  %s4242_s11 = inlined_call_operand.vmem [shape: f32[1,8], index: 11, kind: input, shape index: {}]   ;;  %s4243_s12 = inlined_call_operand.hbm [shape: f32[2,8], index: 12, kind: output, shape index: {}]  }
   0x1   :  { %s17_s23 = sshll.u32 %s4231_s0, 4  ;;  %s18_s23 = int_to_ptr.vmem [resolvable:$true] %s17_s23 }
   0x2   :  { %s3609_s24 = scalar_lea.vmem %s18_s23, 16  ;;  %p3614_p1 = scmp.lt.s32.totalorder %s18_s23, %s18_s23 }
   0x3   :  { %p3610_p0 = scmp.ne.s32.totalorder %s18_s23, %s3609_s24  ;;  %p3615_p2 = scmp.lt.s32.totalorder %s3609_s24, %s3609_s24 }
   0x5   :  { %p3616_p3 = por %p3615_p2, %p3614_p1 }
   0x7   :  { %p3617_p4 = pnand %p3616_p3, %p3610_p0 }
   0x9   :  { %3620 = shalt.err (!%p3617_p4)  }
   0xa   :  { %s3659_s25 = smov [#allocation4]  }
   0xb   :  { %20 = dma.vmem_to_smem %s18_s23, 16, %s3659_s25, [#allocation3] }
   0xc   :  { %3649 = dma.done.wait [#allocation3], 16 }
   0xd   :  { %3650 = vsyncadd [#allocation3], 4294967280 }
   0xe   :  { %22 = sfence }
   0xf   :  { %23 = vsyncpa [#allocation6], 0  ;;  %s3735_s26 = smov 0  }
  0x10 LB: > { %s3741_s0 = sadd.s32 4294967295, %s3657_s26   ;;  %p2946_p5 = scmp.ge.s32.totalorder %s3657_s26, 1  ;;  %s3657_s26 = sphi %s3735_s26, %s29_s26  }
  0x11   : > { %p341_p6 = scmp.lt.s32.totalorder %s3657_s26, 9 }
  0x13   : > { %p342_p7 = pnand %p2946_p5, %p341_p6 }
  0x14   : > { %s2947_s29 = sshll.u32 (!%p342_p7), %s3741_s0, 6  ;;  %s3016_s20 = sshll.u32 (!%p342_p7), %s3741_s0, 1 }
  0x15   : > { %345 = sbr.rel (%p342_p7) target bundleno = 11672 (0x2d98), region = 64  ;;  %p377_p8 = scmp.lt.s32.totalorder (!%p342_p7), %s2947_s29, 511 }
  0x16   : > { %s1193_s21 = scalar_lea.vmem (!%p342_p7), [#allocation2], %s3016_s20  ;;  %p3017_p9 = scmp.ne.s32.totalorder (!%p342_p7), %s3741_s0, 7 }
  0x1a   : > { %v3431_v0 = vld [vmem:[%s4233_s2 + $0x8] sm:$0xff]   ;;  %v3432_v1 = vld [vmem:[%s4233_s2] sm:$0xff]   ;;  %s4245_s29 = smov (!%p377_p8, %s2947_s29), 511  ;;  %vm518_vm0 = vcmask 261120   ;;  %vm1190_vm1 = vcmask 1040384   ;;  %s3664_s28 = smov (!%p3017_p9), 64  }
  0x1b   : > { %3173 = vmatprep.subr.bf16.mxu0 %v3431_v0  ;;  %3209 = vmatprep.subr.bf16.mxu1 %v3431_v0  ;;  %s2948_s14 = sshll.u32 %s4245_s29, 2  ;;  %v3824_v38 = vld [vmem:[%s4234_s3] ss:$0 sm:$0xff]  ;;  %s3665_s29 = smov (!%p3017_p9), 32  }
  0x1c   : > { %3174 = vmatpush3.bf16.msra.mxu0 %v3431_v0  ;;  %3210 = vmatpush3.bf16.msra.mxu1 %v3431_v0  ;;  %s3755_s17 = scalar_lea.vmem %s4232_s1, %s2948_s14  ;;  %s4124_s22 = sld [smem:[#allocation4]] (!%p3017_p9) }
  0x1d   : > { %3175 = vmatprep.subr.bf16.mxu0 %v3432_v1  ;;  %3211 = vmatprep.subr.bf16.mxu1 %v3432_v1  ;;  %v3433_v2 = vld [vmem:[%s3755_s17] sm:$0xff]   ;;  %v3435_v4 = vld [vmem:[%s3755_s17 + $0x8] sm:$0xff]   ;;  %v3437_v6 = vld [vmem:[%s3755_s17 + $0x10] sm:$0xff]   ;;  %s4126_s23 = sld [smem:[#allocation4 + $0x1]] (!%p3017_p9) }
  0x1e   : > { %v3434_v3 = vld [vmem:[%s3755_s17 + $0x80] sm:$0xff]   ;;  %3177 = vmatprep.mubr.msk.bf16.mxu0 %vm518_vm0, %v3433_v2  ;;  %v3436_v5 = vld [vmem:[%s3755_s17 + $0x88] sm:$0xff]   ;;  %v3438_v7 = vld [vmem:[%s3755_s17 + $0x90] sm:$0xff]  }
  0x1f   : > { %3213 = vmatprep.mubr.msk.bf16.mxu1 %vm518_vm0, %v3434_v3  ;;  %v3439_v8 = vld [vmem:[%s3755_s17 + $0x18] sm:$0xff]   ;;  %v3441_v10 = vld [vmem:[%s3755_s17 + $0x20] sm:$0xff]   ;;  %v3443_v12 = vld [vmem:[%s3755_s17 + $0x28] sm:$0xff]  }
  0x20   : > { %3176 = vmatpush3.bf16.msra.mxu0 %v3432_v1  ;;  %3212 = vmatpush3.bf16.msra.mxu1 %v3432_v1  ;;  %v3440_v9 = vld [vmem:[%s3755_s17 + $0x98] sm:$0xff]   ;;  %v3442_v11 = vld [vmem:[%s3755_s17 + $0xa0] sm:$0xff]   ;;  %v3444_v13 = vld [vmem:[%s3755_s17 + $0xa8] sm:$0xff]  }
  0x21   : > { %v3445_v14 = vld [vmem:[%s3755_s17 + $0x30] sm:$0xff]   ;;  %v3447_v16 = vld [vmem:[%s3755_s17 + $0x38] sm:$0xff]   ;;  %v3449_v18 = vld [vmem:[%s3755_s17 + $0x40] sm:$0xff]  }
  0x22   : > { %v3446_v15 = vld [vmem:[%s3755_s17 + $0xb0] sm:$0xff]   ;;  %v3448_v17 = vld [vmem:[%s3755_s17 + $0xb8] sm:$0xff]   ;;  %v3450_v19 = vld [vmem:[%s3755_s17 + $0xc0] sm:$0xff]   ;;  %p2706_p10 = scmp.eq.s32.totalorder (!%p3017_p9), %s4124_s22, 1  ;;  %p2714_p12 = scmp.eq.s32.totalorder (!%p3017_p9), %s4124_s22, 2 }
  0x23   : > { %3178 = vmatmul.mubr.msk.bf16.vlgmr.msra.gmra.mxu0 %vm518_vm0, %v3435_v4  ;;  %3214 = vmatmul.mubr.msk.bf16.vlgmr.msra.gmra.mxu1 %vm518_vm0, %v3436_v5  ;;  %v3451_v20 = vld [vmem:[%s3755_s17 + $0x48] sm:$0xff]   ;;  %v3453_v22 = vld [vmem:[%s3755_s17 + $0x50] sm:$0xff]   ;;  %v3455_v24 = vld [vmem:[%s3755_s17 + $0x58] sm:$0xff]   ;;  %p2763_p11 = scmp.eq.s32.totalorder (!%p3017_p9), %s4126_s23, 1  ;;  %p2768_p13 = scmp.eq.s32.totalorder (!%p3017_p9), %s4126_s23, 2 }
  0x24   : > { %3181 = vmatprep.mubr.msk.bf16.mxu0 %vm518_vm0, %v3437_v6  ;;  %3217 = vmatprep.mubr.msk.bf16.mxu1 %vm518_vm0, %v3438_v7  ;;  %v3452_v21 = vld [vmem:[%s3755_s17 + $0xc8] sm:$0xff]   ;;  %v3454_v23 = vld [vmem:[%s3755_s17 + $0xd0] sm:$0xff]   ;;  %v3456_v25 = vld [vmem:[%s3755_s17 + $0xd8] sm:$0xff]   ;;  %p2722_p0 = scmp.eq.s32.totalorder (!%p3017_p9), %s4124_s22, 3  ;;  %p2776_p1 = scmp.eq.s32.totalorder (!%p3017_p9), %s4126_s23, 3 }
  0x25   : > { %v3457_v26 = vld [vmem:[%s3755_s17 + $0x60] sm:$0xff]   ;;  %v3459_v28 = vld [vmem:[%s3755_s17 + $0x68] sm:$0xff]   ;;  %v3461_v30 = vld [vmem:[%s3755_s17 + $0x70] sm:$0xff]   ;;  %p2730_p2 = scmp.eq.s32.totalorder (!%p3017_p9), %s4124_s22, 4  ;;  %p2784_p3 = scmp.eq.s32.totalorder (!%p3017_p9), %s4126_s23, 4 }
  0x26   : > { %v3458_v27 = vld [vmem:[%s3755_s17 + $0xe0] sm:$0xff]   ;;  %v3460_v29 = vld [vmem:[%s3755_s17 + $0xe8] sm:$0xff]   ;;  %v3462_v31 = vld [vmem:[%s3755_s17 + $0xf0] sm:$0xff]   ;;  %p2738_p4 = scmp.eq.s32.totalorder (!%p3017_p9), %s4124_s22, 5  ;;  %p2792_p5 = scmp.eq.s32.totalorder (!%p3017_p9), %s4126_s23, 5 }
  0x27   : > { %v3463_v32 = vld [vmem:[%s3755_s17 + $0x78] sm:$0xff]   ;;  %p2746_p6 = scmp.eq.s32.totalorder (!%p3017_p9), %s4124_s22, 6  ;;  %p2800_p7 = scmp.eq.s32.totalorder (!%p3017_p9), %s4126_s23, 6 }
  0x28   : > { %v3464_v33 = vld [vmem:[%s3755_s17 + $0xf8] sm:$0xff]   ;;  %p2754_p8 = scmp.eq.s32.totalorder (!%p3017_p9), %s4124_s22, 7 }
  0x2b   : > { %3182 = vmatmul.mubr.msk.bf16.gmra.mxu0 %vm518_vm0, %v3439_v8  ;;  %3218 = vmatmul.mubr.msk.bf16.gmra.mxu1 %vm518_vm0, %v3440_v9 }
  0x2c   : > { %3185 = vmatprep.mubr.msk.bf16.mxu0 %vm518_vm0, %v3441_v10  ;;  %3221 = vmatprep.mubr.msk.bf16.mxu1 %vm518_vm0, %v3442_v11 }
  0x33   : > { %3186 = vmatmul.mubr.msk.bf16.gmra.mxu0 %vm518_vm0, %v3443_v12  ;;  %3222 = vmatmul.mubr.msk.bf16.gmra.mxu1 %vm518_vm0, %v3444_v13 }
  0x34   : > { %3189 = vmatprep.mubr.msk.bf16.mxu0 %vm518_vm0, %v3445_v14  ;;  %3225 = vmatprep.mubr.msk.bf16.mxu1 %vm518_vm0, %v3446_v15 }
  0x3b   : > { %3190 = vmatmul.mubr.msk.bf16.gmra.mxu0 %vm518_vm0, %v3447_v16  ;;  %3226 = vmatmul.mubr.msk.bf16.gmra.mxu1 %vm518_vm0, %v3448_v17 }
  0x3c   : > { %3193 = vmatprep.mubr.msk.bf16.mxu0 %vm518_vm0, %v3449_v18  ;;  %3229 = vmatprep.mubr.msk.bf16.mxu1 %vm518_vm0, %v3450_v19 }
  0x43   : > { %3194 = vmatmul.mubr.msk.bf16.gmra.mxu0 %vm518_vm0, %v3451_v20  ;;  %3230 = vmatmul.mubr.msk.bf16.gmra.mxu1 %vm518_vm0, %v3452_v21 }
  0x44   : > { %3197 = vmatprep.mubr.msk.bf16.mxu0 %vm518_vm0, %v3453_v22  ;;  %3233 = vmatprep.mubr.msk.bf16.mxu1 %vm518_vm0, %v3454_v23 }
  0x4b   : > { %3198 = vmatmul.mubr.msk.bf16.gmra.mxu0 %vm518_vm0, %v3455_v24  ;;  %3234 = vmatmul.mubr.msk.bf16.gmra.mxu1 %vm518_vm0, %v3456_v25 }
  0x4c   : > { %3201 = vmatprep.mubr.msk.bf16.mxu0 %vm518_vm0, %v3457_v26  ;;  %3237 = vmatprep.mubr.msk.bf16.mxu1 %vm518_vm0, %v3458_v27 }
  0x53   : > { %3202 = vmatmul.mubr.msk.bf16.gmra.mxu0 %vm518_vm0, %v3459_v28  ;;  %3238 = vmatmul.mubr.msk.bf16.gmra.mxu1 %vm518_vm0, %v3460_v29 }
  0x54   : > { %3205 = vmatprep.mubr.msk.bf16.mxu0 %vm518_vm0, %v3461_v30  ;;  %3241 = vmatprep.mubr.msk.bf16.mxu1 %vm518_vm0, %v3462_v31 }
  0x5b   : > { %3206 = vmatmul.mubr.msk.bf16.gmra.mxu0 %vm518_vm0, %v3463_v32  ;;  %3242 = vmatmul.mubr.msk.bf16.gmra.mxu1 %vm518_vm0, %v3464_v33 }
  0xe3   : > { %v3179_v34 = vpop.f32.mrf.mxu0  ;;  %v3215_v35 = vpop.f32.mrf.mxu1 }
  0xe4   : > { %v610_v44 = vadd.f32 %v3179_v34, %v3824_v38  ;;  %v1002_v47 = vadd.f32 %v3215_v35, %v3824_v38 }
  0xe5   : > { %v601_v36 = vpop.f32.mrf.mxu0  ;;  %v993_v37 = vpop.f32.mrf.mxu1 }
  0xe6   : > { %v602_v40 = vadd.f32 %v3824_v38, %v601_v36  ;;  %v994_v42 = vadd.f32 %v3824_v38, %v993_v37  ;;  %v730_v58 = vmax.f32 %v610_v44, 0.0  ;;  %v1122_v62 = vmax.f32 %v1002_v47, 0.0 }
  0xe7   : > { %v3180_v39 = vpop.f32.mrf.mxu0  ;;  %v3216_v41 = vpop.f32.mrf.mxu1 }
  0xe8   : > { %v728_v50 = vmax.f32 %v602_v40, 0.0  ;;  %v613_v51 = vadd.f32 %v3180_v39, %v3824_v38  ;;  %v1120_v54 = vmax.f32 %v994_v42, 0.0  ;;  %v1005_v55 = vadd.f32 %v3216_v41, %v3824_v38 }
  0xe9   : > { %v604_v43 = vpop.f32.mrf.mxu0  ;;  %v996_v46 = vpop.f32.mrf.mxu1 }
  0xea   : > { %v605_v45 = vadd.f32 %v3824_v38, %v604_v43  ;;  %v997_v48 = vadd.f32 %v3824_v38, %v996_v46  ;;  %v731_v2 = vmax.f32 %v613_v51, 0.0  ;;  %v1123_v5 = vmax.f32 %v1005_v55, 0.0 }
  0xeb   : > { %v3183_v49 = vpop.f32.mrf.mxu0  ;;  %v3219_v53 = vpop.f32.mrf.mxu1 }
  0xec   : > { %v729_v52 = vmax.f32 %v605_v45, 0.0  ;;  %v1121_v56 = vmax.f32 %v997_v48, 0.0  ;;  %v626_v8 = vadd.f32 %v3183_v49, %v3824_v38  ;;  %v1018_v13 = vadd.f32 %v3219_v53, %v3824_v38 }
  0xed   : > { %v617_v57 = vpop.f32.mrf.mxu0  ;;  %v1009_v61 = vpop.f32.mrf.mxu1 }
  0xee   : > { %v760_v59 = vadd.f32 %v729_v52, %v728_v50  ;;  %v618_v60 = vadd.f32 %v3824_v38, %v617_v57  ;;  %v1152_v63 = vadd.f32 %v1121_v56, %v1120_v54  ;;  %v1010_v0 = vadd.f32 %v3824_v38, %v1009_v61 }
  0xef   : > { %v3184_v1 = vpop.f32.mrf.mxu0  ;;  %v3220_v4 = vpop.f32.mrf.mxu1  ;;  %v734_v26 = vmax.f32 %v626_v8, 0.0  ;;  %v1126_v30 = vmax.f32 %v1018_v13, 0.0 }
  0xf0   : > { %v761_v3 = vadd.f32 %v760_v59, %v730_v58  ;;  %v1153_v6 = vadd.f32 %v1152_v63, %v1122_v62  ;;  %v732_v9 = vmax.f32 %v618_v60, 0.0  ;;  %v1124_v14 = vmax.f32 %v1010_v0, 0.0 }
  0xf1   : > { %v620_v7 = vpop.f32.mrf.mxu0  ;;  %v1012_v12 = vpop.f32.mrf.mxu1  ;;  %v629_v19 = vadd.f32 %v3184_v1, %v3824_v38  ;;  %v1021_v23 = vadd.f32 %v3220_v4, %v3824_v38 }
  0xf2   : > { %v762_v10 = vadd.f32 %v761_v3, %v731_v2  ;;  %v621_v11 = vadd.f32 %v3824_v38, %v620_v7  ;;  %v1154_v15 = vadd.f32 %v1153_v6, %v1123_v5  ;;  %v1013_v16 = vadd.f32 %v3824_v38, %v1012_v12 }
  0xf3   : > { %v3187_v17 = vpop.f32.mrf.mxu0  ;;  %v3223_v21 = vpop.f32.mrf.mxu1  ;;  %v735_v34 = vmax.f32 %v629_v19, 0.0  ;;  %v1127_v37 = vmax.f32 %v1021_v23, 0.0 }
  0xf4   : > { %v763_v18 = vadd.f32 %v762_v10, %v732_v9  ;;  %v733_v20 = vmax.f32 %v621_v11, 0.0  ;;  %v1155_v22 = vadd.f32 %v1154_v15, %v1124_v14  ;;  %v1125_v24 = vmax.f32 %v1013_v16, 0.0 }
  0xf5   : > { %v633_v25 = vpop.f32.mrf.mxu0  ;;  %v1025_v29 = vpop.f32.mrf.mxu1  ;;  %v642_v41 = vadd.f32 %v3187_v17, %v3824_v38  ;;  %v1034_v46 = vadd.f32 %v3223_v21, %v3824_v38 }
  0xf6   : > { %v764_v27 = vadd.f32 %v763_v18, %v733_v20  ;;  %v634_v28 = vadd.f32 %v3824_v38, %v633_v25  ;;  %v1156_v31 = vadd.f32 %v1155_v22, %v1125_v24  ;;  %v1026_v32 = vadd.f32 %v3824_v38, %v1025_v29 }
  0xf7   : > { %v3188_v33 = vpop.f32.mrf.mxu0  ;;  %v3224_v36 = vpop.f32.mrf.mxu1  ;;  %v738_v59 = vmax.f32 %v642_v41, 0.0  ;;  %v1130_v63 = vmax.f32 %v1034_v46, 0.0 }
  0xf8   : > { %v765_v35 = vadd.f32 %v764_v27, %v734_v26  ;;  %v1157_v39 = vadd.f32 %v1156_v31, %v1126_v30  ;;  %v736_v42 = vmax.f32 %v634_v28, 0.0  ;;  %v1128_v47 = vmax.f32 %v1026_v32, 0.0 }
  0xf9   : > { %v636_v40 = vpop.f32.mrf.mxu0  ;;  %v1028_v45 = vpop.f32.mrf.mxu1  ;;  %v645_v52 = vadd.f32 %v3188_v33, %v3824_v38  ;;  %v1037_v56 = vadd.f32 %v3224_v36, %v3824_v38 }
  0xfa   : > { %v766_v43 = vadd.f32 %v765_v35, %v735_v34  ;;  %v637_v44 = vadd.f32 %v3824_v38, %v636_v40  ;;  %v1158_v48 = vadd.f32 %v1157_v39, %v1127_v37  ;;  %v1029_v49 = vadd.f32 %v3824_v38, %v1028_v45 }
  0xfb   : > { %v3191_v50 = vpop.f32.mrf.mxu0  ;;  %v3227_v54 = vpop.f32.mrf.mxu1  ;;  %v739_v3 = vmax.f32 %v645_v52, 0.0  ;;  %v1131_v6 = vmax.f32 %v1037_v56, 0.0 }
  0xfc   : > { %v767_v51 = vadd.f32 %v766_v43, %v736_v42  ;;  %v737_v53 = vmax.f32 %v637_v44, 0.0  ;;  %v1159_v55 = vadd.f32 %v1158_v48, %v1128_v47  ;;  %v1129_v57 = vmax.f32 %v1029_v49, 0.0 }
  0xfd   : > { %v649_v58 = vpop.f32.mrf.mxu0  ;;  %v1041_v62 = vpop.f32.mrf.mxu1  ;;  %v658_v9 = vadd.f32 %v3191_v50, %v3824_v38  ;;  %v1050_v14 = vadd.f32 %v3227_v54, %v3824_v38 }
  0xfe   : > { %v768_v60 = vadd.f32 %v767_v51, %v737_v53  ;;  %v650_v61 = vadd.f32 %v3824_v38, %v649_v58  ;;  %v1160_v0 = vadd.f32 %v1159_v55, %v1129_v57  ;;  %v1042_v1 = vadd.f32 %v3824_v38, %v1041_v62 }
  0xff   : > { %v3192_v2 = vpop.f32.mrf.mxu0  ;;  %v3228_v5 = vpop.f32.mrf.mxu1  ;;  %v742_v27 = vmax.f32 %v658_v9, 0.0  ;;  %v1134_v31 = vmax.f32 %v1050_v14, 0.0 }
 0x100   : > { %v769_v4 = vadd.f32 %v768_v60, %v738_v59  ;;  %v1161_v7 = vadd.f32 %v1160_v0, %v1130_v63  ;;  %v740_v10 = vmax.f32 %v650_v61, 0.0  ;;  %v1132_v15 = vmax.f32 %v1042_v1, 0.0 }
 0x101   : > { %v652_v8 = vpop.f32.mrf.mxu0  ;;  %v1044_v13 = vpop.f32.mrf.mxu1  ;;  %v661_v20 = vadd.f32 %v3192_v2, %v3824_v38  ;;  %v1053_v24 = vadd.f32 %v3228_v5, %v3824_v38 }
 0x102   : > { %v770_v11 = vadd.f32 %v769_v4, %v739_v3  ;;  %v653_v12 = vadd.f32 %v3824_v38, %v652_v8  ;;  %v1162_v16 = vadd.f32 %v1161_v7, %v1131_v6  ;;  %v1045_v17 = vadd.f32 %v3824_v38, %v1044_v13 }
 0x103   : > { %v3195_v18 = vpop.f32.mrf.mxu0  ;;  %v3231_v22 = vpop.f32.mrf.mxu1  ;;  %v743_v35 = vmax.f32 %v661_v20, 0.0  ;;  %v1135_v39 = vmax.f32 %v1053_v24, 0.0 }
 0x104   : > { %v771_v19 = vadd.f32 %v770_v11, %v740_v10  ;;  %v741_v21 = vmax.f32 %v653_v12, 0.0  ;;  %v1163_v23 = vadd.f32 %v1162_v16, %v1132_v15  ;;  %v1133_v25 = vmax.f32 %v1045_v17, 0.0 }
 0x105   : > { %v665_v26 = vpop.f32.mrf.mxu0  ;;  %v1057_v30 = vpop.f32.mrf.mxu1  ;;  %v674_v42 = vadd.f32 %v3195_v18, %v3824_v38  ;;  %v1066_v47 = vadd.f32 %v3231_v22, %v3824_v38 }
 0x106   : > { %v772_v28 = vadd.f32 %v771_v19, %v741_v21  ;;  %v666_v29 = vadd.f32 %v3824_v38, %v665_v26  ;;  %v1164_v32 = vadd.f32 %v1163_v23, %v1133_v25  ;;  %v1058_v33 = vadd.f32 %v3824_v38, %v1057_v30 }
 0x107   : > { %v3196_v34 = vpop.f32.mrf.mxu0  ;;  %v3232_v37 = vpop.f32.mrf.mxu1  ;;  %v746_v60 = vmax.f32 %v674_v42, 0.0  ;;  %v1138_v0 = vmax.f32 %v1066_v47, 0.0 }
 0x108   : > { %v773_v36 = vadd.f32 %v772_v28, %v742_v27  ;;  %v1165_v40 = vadd.f32 %v1164_v32, %v1134_v31  ;;  %v744_v43 = vmax.f32 %v666_v29, 0.0  ;;  %v1136_v48 = vmax.f32 %v1058_v33, 0.0 }
 0x109   : > { %v668_v41 = vpop.f32.mrf.mxu0  ;;  %v1060_v46 = vpop.f32.mrf.mxu1  ;;  %v677_v53 = vadd.f32 %v3196_v34, %v3824_v38  ;;  %v1069_v57 = vadd.f32 %v3232_v37, %v3824_v38 }
 0x10a   : > { %v774_v44 = vadd.f32 %v773_v36, %v743_v35  ;;  %v669_v45 = vadd.f32 %v3824_v38, %v668_v41  ;;  %v1166_v49 = vadd.f32 %v1165_v40, %v1135_v39  ;;  %v1061_v50 = vadd.f32 %v3824_v38, %v1060_v46 }
 0x10b   : > { %v3199_v51 = vpop.f32.mrf.mxu0  ;;  %v3235_v55 = vpop.f32.mrf.mxu1  ;;  %v747_v4 = vmax.f32 %v677_v53, 0.0  ;;  %v1139_v7 = vmax.f32 %v1069_v57, 0.0 }
 0x10c   : > { %v775_v52 = vadd.f32 %v774_v44, %v744_v43  ;;  %v745_v54 = vmax.f32 %v669_v45, 0.0  ;;  %v1167_v56 = vadd.f32 %v1166_v49, %v1136_v48  ;;  %v1137_v58 = vmax.f32 %v1061_v50, 0.0 }
 0x10d   : > { %v681_v59 = vpop.f32.mrf.mxu0  ;;  %v1073_v63 = vpop.f32.mrf.mxu1  ;;  %v690_v10 = vadd.f32 %v3199_v51, %v3824_v38  ;;  %v1082_v15 = vadd.f32 %v3235_v55, %v3824_v38 }
 0x10e   : > { %v776_v61 = vadd.f32 %v775_v52, %v745_v54  ;;  %v682_v62 = vadd.f32 %v3824_v38, %v681_v59  ;;  %v1168_v1 = vadd.f32 %v1167_v56, %v1137_v58  ;;  %v1074_v2 = vadd.f32 %v3824_v38, %v1073_v63 }
 0x10f   : > { %v3200_v3 = vpop.f32.mrf.mxu0  ;;  %v3236_v6 = vpop.f32.mrf.mxu1  ;;  %v750_v28 = vmax.f32 %v690_v10, 0.0  ;;  %v1142_v32 = vmax.f32 %v1082_v15, 0.0 }
 0x110   : > { %v777_v5 = vadd.f32 %v776_v61, %v746_v60  ;;  %v1169_v8 = vadd.f32 %v1168_v1, %v1138_v0  ;;  %v748_v11 = vmax.f32 %v682_v62, 0.0  ;;  %v1140_v16 = vmax.f32 %v1074_v2, 0.0 }
 0x111   : > { %v684_v9 = vpop.f32.mrf.mxu0  ;;  %v1076_v14 = vpop.f32.mrf.mxu1  ;;  %v693_v21 = vadd.f32 %v3200_v3, %v3824_v38  ;;  %v1085_v25 = vadd.f32 %v3236_v6, %v3824_v38 }
 0x112   : > { %v778_v12 = vadd.f32 %v777_v5, %v747_v4  ;;  %v685_v13 = vadd.f32 %v3824_v38, %v684_v9  ;;  %v1170_v17 = vadd.f32 %v1169_v8, %v1139_v7  ;;  %v1077_v18 = vadd.f32 %v3824_v38, %v1076_v14 }
 0x113   : > { %v3203_v19 = vpop.f32.mrf.mxu0  ;;  %v3239_v23 = vpop.f32.mrf.mxu1  ;;  %v751_v36 = vmax.f32 %v693_v21, 0.0  ;;  %v1143_v40 = vmax.f32 %v1085_v25, 0.0 }
 0x114   : > { %v779_v20 = vadd.f32 %v778_v12, %v748_v11  ;;  %v749_v22 = vmax.f32 %v685_v13, 0.0  ;;  %v1171_v24 = vadd.f32 %v1170_v17, %v1140_v16  ;;  %v1141_v26 = vmax.f32 %v1077_v18, 0.0 }
 0x115   : > { %v697_v27 = vpop.f32.mrf.mxu0  ;;  %v1089_v31 = vpop.f32.mrf.mxu1  ;;  %v706_v43 = vadd.f32 %v3203_v19, %v3824_v38  ;;  %v1098_v48 = vadd.f32 %v3239_v23, %v3824_v38 }
 0x116   : > { %v780_v29 = vadd.f32 %v779_v20, %v749_v22  ;;  %v698_v30 = vadd.f32 %v3824_v38, %v697_v27  ;;  %v1172_v33 = vadd.f32 %v1171_v24, %v1141_v26  ;;  %v1090_v34 = vadd.f32 %v3824_v38, %v1089_v31 }
 0x117   : > { %v3204_v35 = vpop.f32.mrf.mxu0  ;;  %v3240_v39 = vpop.f32.mrf.mxu1  ;;  %v754_v61 = vmax.f32 %v706_v43, 0.0  ;;  %v1146_v1 = vmax.f32 %v1098_v48, 0.0 }
 0x118   : > { %v781_v37 = vadd.f32 %v780_v29, %v750_v28  ;;  %v1173_v41 = vadd.f32 %v1172_v33, %v1142_v32  ;;  %v752_v44 = vmax.f32 %v698_v30, 0.0  ;;  %v1144_v49 = vmax.f32 %v1090_v34, 0.0 }
 0x119   : > { %v700_v42 = vpop.f32.mrf.mxu0  ;;  %v1092_v47 = vpop.f32.mrf.mxu1  ;;  %v709_v54 = vadd.f32 %v3204_v35, %v3824_v38  ;;  %v1101_v58 = vadd.f32 %v3240_v39, %v3824_v38 }
 0x11a   : > { %v782_v45 = vadd.f32 %v781_v37, %v751_v36  ;;  %v701_v46 = vadd.f32 %v3824_v38, %v700_v42  ;;  %v1174_v50 = vadd.f32 %v1173_v41, %v1143_v40  ;;  %v1093_v51 = vadd.f32 %v3824_v38, %v1092_v47 }
 0x11b   : > { %v3207_v52 = vpop.f32.mrf.mxu0  ;;  %v3243_v56 = vpop.f32.mrf.mxu1  ;;  %v755_v5 = vmax.f32 %v709_v54, 0.0  ;;  %v1147_v8 = vmax.f32 %v1101_v58, 0.0 }
 0x11c   : > { %v783_v53 = vadd.f32 %v782_v45, %v752_v44  ;;  %v753_v55 = vmax.f32 %v701_v46, 0.0  ;;  %v1175_v57 = vadd.f32 %v1174_v50, %v1144_v49  ;;  %v1145_v59 = vmax.f32 %v1093_v51, 0.0 }
 0x11d   : > { %v713_v60 = vpop.f32.mrf.mxu0  ;;  %v1105_v0 = vpop.f32.mrf.mxu1  ;;  %v722_v11 = vadd.f32 %v3207_v52, %v3824_v38  ;;  %v1114_v16 = vadd.f32 %v3243_v56, %v3824_v38 }
 0x11e   : > { %v784_v62 = vadd.f32 %v783_v53, %v753_v55  ;;  %v714_v63 = vadd.f32 %v3824_v38, %v713_v60  ;;  %v1176_v2 = vadd.f32 %v1175_v57, %v1145_v59  ;;  %v1106_v3 = vadd.f32 %v3824_v38, %v1105_v0 }
 0x11f   : > { %v3208_v4 = vpop.f32.mrf.mxu0  ;;  %v3244_v7 = vpop.f32.mrf.mxu1  ;;  %v758_v26 = vmax.f32 %v722_v11, 0.0  ;;  %v1150_v28 = vmax.f32 %v1114_v16, 0.0 }
 0x120   : > { %v785_v6 = vadd.f32 %v784_v62, %v754_v61  ;;  %v1177_v9 = vadd.f32 %v1176_v2, %v1146_v1  ;;  %v756_v12 = vmax.f32 %v714_v63, 0.0  ;;  %v1148_v17 = vmax.f32 %v1106_v3, 0.0 }
 0x121   : > { %v716_v10 = vpop.f32.mrf.mxu0  ;;  %v1108_v15 = vpop.f32.mrf.mxu1  ;;  %v725_v21 = vadd.f32 %v3208_v4, %v3824_v38  ;;  %v1117_v24 = vadd.f32 %v3244_v7, %v3824_v38 }
 0x122   : > { %v786_v13 = vadd.f32 %v785_v6, %v755_v5  ;;  %v717_v14 = vadd.f32 %v3824_v38, %v716_v10  ;;  %v1178_v18 = vadd.f32 %v1177_v9, %v1147_v8  ;;  %v1109_v19 = vadd.f32 %v3824_v38, %v1108_v15 }
 0x123   : > { %v759_v30 = vmax.f32 %v725_v21, 0.0  ;;  %v1151_v32 = vmax.f32 %v1117_v24, 0.0 }
 0x124   : > { %v787_v20 = vadd.f32 %v786_v13, %v756_v12  ;;  %v757_v22 = vmax.f32 %v717_v14, 0.0  ;;  %v1179_v23 = vadd.f32 %v1178_v18, %v1148_v17  ;;  %v1149_v25 = vmax.f32 %v1109_v19, 0.0 }
 0x126   : > { %v788_v27 = vadd.f32 %v787_v20, %v757_v22  ;;  %v1180_v29 = vadd.f32 %v1179_v23, %v1149_v25 }
 0x128   : > { %v789_v31 = vadd.f32 %v788_v27, %v758_v26  ;;  %v1181_v33 = vadd.f32 %v1180_v29, %v1150_v28 }
 0x12a   : > { %v790_v34 = vadd.f32 %v789_v31, %v759_v30  ;;  %v1182_v35 = vadd.f32 %v1181_v33, %v1151_v32 }
 0x12c   : > { %v791_v36 = vrot.slane %v790_v34, 4  ;;  %v1183_v37 = vrot.slane %v1182_v35, 4 }
 0x12e   : > { %v792_v39 = vadd.f32 %v791_v36, %v790_v34  ;;  %v1184_v40 = vadd.f32 %v1183_v37, %v1182_v35 }
 0x130   : > { %v793_v41 = vrot.slane %v792_v39, 2  ;;  %v1185_v42 = vrot.slane %v1184_v40, 2 }
 0x132   : > { %v794_v43 = vadd.f32 %v793_v41, %v792_v39  ;;  %v1186_v38 = vadd.f32 %v1185_v42, %v1184_v40 }
 0x134   : > { %v795_v44 = vrot.slane %v794_v43, 1  ;;  %v1187_v45 = vrot.slane %v1186_v38, 1 }
 0x136   : > { %v796_v46 = vadd.f32 %v795_v44, %v794_v43  ;;  %v1188_v47 = vadd.f32 %v1187_v45, %v1186_v38 }
 0x137   : > { %1198 = sbr.rel (%p3017_p9) target bundleno = 11657 (0x2d89), region = 68  ;;  %p2808_p9 = scmp.eq.s32.totalorder (!%p3017_p9), %s4126_s23, 7 }
 0x138   : > { %v798_v48 = vmul.f32 0.00390625, %v796_v46  ;;  %v1189_v49 = vmul.f32 0.00390625, %v1188_v47 }
 0x13a   : > { %v1191_v50 = vsel %vm1190_vm1, %v798_v48, %v1189_v49 }
 0x13b   : > { %1194 = vst [vmem:[%s1193_s21] sm:$0x3] %v1191_v50 }
 0x13c   : > { %v3465_v51 = vld [vmem:[%s4235_s4 + $0x38] sm:$0xff]   ;;  %v3660_v52 = vmov 0.0   ;;  %v3466_v53 = vld [vmem:[%s4235_s4 + $0x30] sm:$0xff]   ;;  %vm3661_vm2 = vmmov 0   ;;  %v3467_v54 = vld [vmem:[%s4235_s4 + $0x28] sm:$0xff]   ;;  %v1241_v56 = vlaneseq  ;;  %v3663_v7 = vmov 0  }
 0x13d   : > { %3245 = vmatprep.subr.bf16.mxu0 %v3660_v52  ;;  %3265 = vmatprep.subr.bf16.mxu1 %v3660_v52  ;;  %v3912_v55 = vld [vmem:[%s4236_s5 + $0x8] sm:$0xff]   ;;  %v3919_v57 = vld [vmem:[%s4236_s5] sm:$0xff]   ;;  %v3469_v62 = vld [vmem:[%s4235_s4 + $0x18] sm:$0xff]   ;;  %v3662_v5 = vmov 1983009808   ;;  %vm1996_vm3 = vcmask 1041408  }
 0x13e   : > { %3246 = vmatpush3.bf16.msra.mxu0 %v3465_v51  ;;  %3269 = vmatprep.mubr.msk.bf16.mxu1 %vm3661_vm2, %v3660_v52  ;;  %v3468_v58 = vld [vmem:[%s4235_s4 + $0x20] sm:$0xff]   ;;  %v1242_v61 = vshrl.u32 %v1241_v56, 7  ;;  %v1239_v6 = vunpack.c.l.s4 %v3662_v5  ;;  %v3470_v14 = vld [vmem:[%s4235_s4 + $0x10] sm:$0xff]   ;;  %v3472_v19 = vld [vmem:[%s4235_s4 + $0x8] sm:$0xff]   ;;  %vm1998_vm4 = vcmask 1043456   ;;  %vm2000_vm5 = vcmask 1045504  }
 0x13f   : > { %3247 = vmatprep.subr.bf16.mxu0 %v3660_v52  ;;  %3261 = vmatprep.mubr.msk.bf16.mxu0 %vm3661_vm2, %v3660_v52  ;;  %v3474_v22 = vld [vmem:[%s4235_s4] sm:$0xff]   ;;  %s2707_s24 = scalar_select %p2706_p10, 1, 0 }
 0x140   : > { %3266 = vmatpush3.bf16.msra.mxu1 %v3912_v55  ;;  %v1240_v8 = vunpack.c.0.s8 %v1239_v6  ;;  %v3018_v28 = vld [vmem:[%s4237_s6] ss:$0 sm:$0xff]  ;;  %s2764_s25 = scalar_select %p2763_p11, 1, 0 }
 0x141   : > { %3267 = vmatprep.subr.bf16.mxu1 %v3660_v52  ;;  %s2715_s27 = scalar_select %p2714_p12, 1, 0 }
 0x142   : > { %3248 = vmatpush3.bf16.msra.mxu0 %v3466_v53  ;;  %v1199_v59 = vld [vmem:[#allocation2] sm:$0x3]  ;;  %v1200_v60 = vld [vmem:[#allocation2 + $0x2] sm:$0x3]  ;;  %v1201_v63 = vld [vmem:[#allocation2 + $0x4] sm:$0x3]  ;;  %v1243_v11 = vsub.s32 %v1240_v8, %v1242_v61 }
 0x143   : > { %3249 = vmatprep.subr.bf16.mxu0 %v3660_v52  ;;  %v1202_v0 = vld [vmem:[#allocation2 + $0x6] sm:$0x3]  ;;  %v1203_v1 = vld [vmem:[#allocation2 + $0x8] sm:$0x3]  ;;  %v1204_v2 = vld [vmem:[#allocation2 + $0xa] sm:$0x3]  ;;  %v1236_v9 = vcombine.low %v1199_v59, %v1200_v60 }
 0x144   : > { %3268 = vmatpush3.bf16.msra.mxu1 %v3919_v57  ;;  %v1205_v3 = vld [vmem:[#allocation2 + $0xc] sm:$0x3]  ;;  %v1206_v4 = vld [vmem:[#allocation2 + $0xe] sm:$0x3]  ;;  %v1237_v10 = vcombine.low %v1201_v63, %v1202_v0  ;;  %v1253_v12 = vcombine.low %v1203_v1, %v1204_v2  ;;  %s2769_s30 = scalar_select %p2768_p13, 1, 0 }
 0x145   : > { %3273 = vmatprep.subr.bf16.mxu1 %v3660_v52  ;;  %v1254_v13 = vcombine.low %v1205_v3, %v1206_v4  ;;  %v1244_v15 = vrot.slane %v1236_v9, %v1243_v11  ;;  %s2723_s13 = scalar_select %p2722_p0, 1, 0 }
 0x146   : > { %3250 = vmatpush3.bf16.msra.mxu0 %v3467_v54  ;;  %v1251_v16 = vrot.slane %v1237_v10, %v1243_v11  ;;  %v1261_v17 = vrot.slane %v1253_v12, %v1243_v11  ;;  %s2777_s14 = scalar_select %p2776_p1, 1, 0 }
 0x147   : > { %3251 = vmatprep.subr.bf16.mxu0 %v3660_v52  ;;  %3270 = vmatmul.mubr.bf16.vlgmr.msra.gmra.mxu1 %v3663_v7  ;;  %v1268_v18 = vrot.slane %v1254_v13, %v1243_v11  ;;  %s2731_s15 = scalar_select %p2730_p2, 1, 0 }
 0x148   : > { %3274 = vmatpush3.bf16.msra.mxu1 %v3912_v55  ;;  %3277 = vmatprep.mubr.msk.bf16.mxu1 %vm3661_vm2, %v3660_v52  ;;  %v1252_v20 = vcombine.low %v1244_v15, %v1251_v16  ;;  %s2785_s16 = scalar_select %p2784_p3, 1, 0 }
 0x149   : > { %3275 = vmatprep.subr.bf16.mxu1 %v3660_v52  ;;  %v1269_v21 = vcombine.low %v1261_v17, %v1268_v18  ;;  %s2739_s17 = scalar_select %p2738_p4, 1, 0 }
 0x14a   : > { %3252 = vmatpush3.bf16.msra.mxu0 %v3468_v58  ;;  %s2793_s18 = scalar_select %p2792_p5, 1, 0 }
 0x14b   : > { %3253 = vmatprep.subr.bf16.mxu0 %v3660_v52  ;;  %v1272_v23 = vpack.c.bf16 %v1269_v21, %v1252_v20  ;;  %s2747_s19 = scalar_select %p2746_p6, 1, 0 }
 0x14c   : > { %3276 = vmatpush3.bf16.msra.mxu1 %v3919_v57  ;;  %s2801_s20 = scalar_select %p2800_p7, 1, 0 }
 0x14d   : > { %3281 = vmatprep.subr.bf16.mxu1 %v3660_v52 }
 0x14e   : > { %3254 = vmatpush3.bf16.msra.mxu0 %v3469_v62 }
 0x14f   : > { %3255 = vmatprep.subr.bf16.mxu0 %v3660_v52 }
 0x152   : > { %3256 = vmatpush3.bf16.msra.mxu0 %v3470_v14 }
 0x153   : > { %3257 = vmatprep.subr.bf16.mxu0 %v3660_v52 }
 0x156   : > { %3258 = vmatpush3.bf16.msra.mxu0 %v3472_v19 }
 0x157   : > { %3259 = vmatprep.subr.bf16.mxu0 %v3660_v52 }
 0x15a   : > { %3260 = vmatpush3.bf16.msra.mxu0 %v3474_v22 }
 0x15b   : > { %3297 = vmatprep.subr.bf16.mxu0 %v3660_v52 }
 0x15d   : > { %3262 = vmatmul.mubr.bf16.vlgmr.msra.gmra.mxu0 %v1272_v23 }
 0x15e   : > { %3298 = vmatpush3.bf16.msra.mxu0 %v3912_v55  ;;  %3301 = vmatprep.mubr.msk.bf16.mxu0 %vm3661_vm2, %v3660_v52 }
 0x15f   : > { %3299 = vmatprep.subr.bf16.mxu0 %v3660_v52 }
 0x162   : > { %3300 = vmatpush3.bf16.msra.mxu0 %v3919_v57 }
 0x163   : > { %3313 = vmatprep.subr.bf16.mxu0 %v3660_v52 }
 0x207   : > { %v1417_v24 = vpop.f32.mrf.mxu1 }
 0x209   : > { %v3271_v25 = vpop.f32.mrf.mxu1 }
 0x20b   : > { %v1420_v26 = vpop.f32.mrf.mxu1 }
 0x20d   : > { %v3272_v27 = vpop.f32.mrf.mxu1 }
 0x21d   : > { %v1361_v29 = vpop.f32.mrf.mxu0 }
 0x21e   : > { %v3961_v30 = vadd.f32 %v3018_v28, %v1361_v29 }
 0x21f   : > { %v3263_v31 = vpop.f32.mrf.mxu0 }
 0x220   : > { %v1423_v32 = vadd.f32 %v1417_v24, %v3961_v30 }
 0x221   : > { %v1364_v33 = vpop.f32.mrf.mxu0 }
 0x222   : > { %3481 = vtanh.f32 %v1423_v32  ;;  %v3964_v34 = vadd.f32 %v3018_v28, %v1364_v33  ;;  %v3029_v37 = vmul.f32 -1.442695, %v1423_v32 }
 0x223   : > { %v3264_v35 = vpop.f32.mrf.mxu0 }
 0x224   : > { %3483 = vpow2.f32 %v3029_v37 }
 0x22f   : > { %v3482_v36 = vpop.eup %3481 }
 0x230   : > { %1433 = vrot.lane.b32.xlu0 %v3482_v36, %s3664_s28 }
 0x231   : > { %v3484_v39 = vpop.eup %3483 }
 0x232   : > { %v1427_v40 = vadd.f32 1.0, %v3484_v39 }
 0x234   : > { %3485 = vrcp.f32 %v1427_v40 }
 0x241   : > { %v3486_v41 = vpop.eup %3485 }
 0x242   : > { %v1431_v38 = vmul.f32 0.0, %v3486_v41 }
 0x2a2   : > { %v1434_v42 = vpop.permute.xlu0 %1433 }
 0x2a3   : > { %v1436_v43 = vmul.f32 %v3486_v41, %v1434_v42 }
 0x2a5   : > { %1438 = vrot.lane.b32.xlu0 %v1436_v43, %s3665_s29 }
 0x317   : > { %v1439_v44 = vpop.permute.xlu0 %1438 }
 0x318   : > { %v1441_v45 = vadd.f32 %v1439_v44, %v1431_v38 }
 0x31a   : > { %3487 = vtanh.f32 %v1441_v45  ;;  %v1507_v3 = vrot.slane %v1441_v45, 6 }
 0x327   : > { %v3488_v46 = vpop.eup %3487 }
 0x328   : > { %1444 = vrot.lane.b32.xlu1 %v3488_v46, %s3664_s28 }
 0x39a   : > { %v1445_v47 = vpop.permute.xlu1 %1444 }
 0x39b   : > { %v3969_v48 = vmul.f32 %v3486_v41, %v1445_v47 }
 0x39d   : > { %v1448_v49 = vpack.c.bf16 %v3969_v48, %v3969_v48 }
 0x39f   : > { %1450 = vrot.lane.b32.xlu1 %v1448_v49, %s3665_s29 }
 0x411   : > { %v1451_v50 = vpop.permute.xlu1 %1450 }
 0x412   : > { %3278 = vmatmul.mubr.msk.bf16.vlgmr.msra.gmra.mxu1 %vm518_vm0, %v1451_v50 }
 0x413   : > { %3282 = vmatpush3.bf16.msra.mxu1 %v3912_v55  ;;  %3285 = vmatprep.mubr.msk.bf16.mxu1 %vm3661_vm2, %v3660_v52 }
 0x414   : > { %3283 = vmatprep.subr.bf16.mxu1 %v3660_v52 }
 0x417   : > { %3284 = vmatpush3.bf16.msra.mxu1 %v3919_v57 }
 0x418   : > { %3289 = vmatprep.subr.bf16.mxu1 %v3660_v52 }
 0x4d2   : > { %v1489_v51 = vpop.f32.mrf.mxu1 }
 0x4d3   : > { %v1496_v53 = vrot.slane %v1489_v51, 6 }
 0x4d4   : > { %v3279_v54 = vpop.f32.mrf.mxu1 }
 0x4d5   : > { %v1498_v56 = vadd.f32 %v1496_v53, %v3961_v30 }
 0x4d6   : > { %v1492_v58 = vpop.f32.mrf.mxu1 }
 0x4d7   : > { %3489 = vtanh.f32 %v1498_v56  ;;  %v3031_v61 = vmul.f32 -1.442695, %v1498_v56 }
 0x4d8   : > { %v3280_v59 = vpop.f32.mrf.mxu1 }
 0x4d9   : > { %3491 = vpow2.f32 %v3031_v61 }
 0x4e4   : > { %v3490_v60 = vpop.eup %3489 }
 0x4e5   : > { %1511 = vrot.lane.b32.xlu0 %v3490_v60, %s3664_s28 }
 0x4e6   : > { %v3492_v62 = vpop.eup %3491 }
 0x4e7   : > { %v1502_v63 = vadd.f32 1.0, %v3492_v62 }
 0x4e9   : > { %3493 = vrcp.f32 %v1502_v63 }
 0x4f6   : > { %v3494_v0 = vpop.eup %3493 }
 0x4f7   : > { %v1509_v4 = vmul.f32 %v3494_v0, %v1507_v3 }
 0x557   : > { %v1512_v1 = vpop.permute.xlu0 %1511 }
 0x558   : > { %v1514_v2 = vmul.f32 %v3494_v0, %v1512_v1 }
 0x55a   : > { %1516 = vrot.lane.b32.xlu1 %v1514_v2, %s3665_s29 }
 0x5cc   : > { %v1517_v5 = vpop.permute.xlu1 %1516 }
 0x5cd   : > { %v1519_v6 = vadd.f32 %v1517_v5, %v1509_v4 }
 0x5cf   : > { %3495 = vtanh.f32 %v1519_v6  ;;  %v1586_v27 = vrot.slane %v1519_v6, 6 }
 0x5dc   : > { %v3496_v8 = vpop.eup %3495 }
 0x5dd   : > { %1522 = vrot.lane.b32.xlu0 %v3496_v8, %s3664_s28 }
 0x64f   : > { %v1523_v9 = vpop.permute.xlu0 %1522 }
 0x650   : > { %v1525_v10 = vmul.f32 %v3494_v0, %v1523_v9 }
 0x652   : > { %v1526_v11 = vpack.c.bf16 %v1525_v10, %v1525_v10  ;;  %v1997_v36 = vsel %vm1996_vm3, %v3969_v48, %v1525_v10 }
 0x654   : > { %v1528_v12 = vrot.slane %v1526_v11, 1 }
 0x656   : > { %1529 = vrot.lane.b32.xlu1 %v1528_v12, %s3665_s29 }
 0x6c8   : > { %v1530_v13 = vpop.permute.xlu1 %1529 }
 0x6c9   : > { %3286 = vmatmul.mubr.msk.bf16.vlgmr.msra.gmra.mxu1 %vm518_vm0, %v1530_v13 }
 0x6ca   : > { %3290 = vmatpush3.bf16.msra.mxu1 %v3912_v55  ;;  %3293 = vmatprep.mubr.msk.bf16.mxu1 %vm3661_vm2, %v3660_v52 }
 0x6cb   : > { %3291 = vmatprep.subr.bf16.mxu1 %v3660_v52 }
 0x6ce   : > { %3292 = vmatpush3.bf16.msra.mxu1 %v3919_v57 }
 0x6cf   : > { %3305 = vmatprep.subr.bf16.mxu1 %v3660_v52 }
 0x789   : > { %v1568_v14 = vpop.f32.mrf.mxu1 }
 0x78a   : > { %v1575_v15 = vrot.slane %v1568_v14, 4 }
 0x78b   : > { %v3287_v16 = vpop.f32.mrf.mxu1 }
 0x78c   : > { %v1577_v17 = vadd.f32 %v1575_v15, %v3961_v30 }
 0x78d   : > { %v1571_v18 = vpop.f32.mrf.mxu1 }
 0x78e   : > { %3497 = vtanh.f32 %v1577_v17  ;;  %v3033_v21 = vmul.f32 -1.442695, %v1577_v17 }
 0x78f   : > { %v3288_v19 = vpop.f32.mrf.mxu1 }
 0x790   : > { %3499 = vpow2.f32 %v3033_v21 }
 0x79b   : > { %v3498_v20 = vpop.eup %3497 }
 0x79c   : > { %1590 = vrot.lane.b32.xlu0 %v3498_v20, %s3664_s28 }
 0x79d   : > { %v3500_v22 = vpop.eup %3499 }
 0x79e   : > { %v1581_v23 = vadd.f32 1.0, %v3500_v22 }
 0x7a0   : > { %3501 = vrcp.f32 %v1581_v23 }
 0x7ad   : > { %v3502_v24 = vpop.eup %3501 }
 0x7ae   : > { %v1588_v28 = vmul.f32 %v3502_v24, %v1586_v27 }
 0x80e   : > { %v1591_v25 = vpop.permute.xlu0 %1590 }
 0x80f   : > { %v1593_v26 = vmul.f32 %v3502_v24, %v1591_v25 }
 0x811   : > { %1595 = vrot.lane.b32.xlu1 %v1593_v26, %s3665_s29 }
 0x883   : > { %v1596_v29 = vpop.permute.xlu1 %1595 }
 0x884   : > { %v1598_v31 = vadd.f32 %v1596_v29, %v1588_v28 }
 0x886   : > { %3503 = vtanh.f32 %v1598_v31  ;;  %v1665_v56 = vrot.slane %v1598_v31, 6 }
 0x893   : > { %v3504_v32 = vpop.eup %3503 }
 0x894   : > { %1601 = vrot.lane.b32.xlu0 %v3504_v32, %s3664_s28 }
 0x906   : > { %v1602_v33 = vpop.permute.xlu0 %1601 }
 0x907   : > { %v1604_v35 = vmul.f32 %v3502_v24, %v1602_v33 }
 0x909   : > { %v1605_v37 = vpack.c.bf16 %v1604_v35, %v1604_v35  ;;  %v1999_v39 = vsel %vm1998_vm4, %v1997_v36, %v1604_v35 }
 0x90b   : > { %v1607_v40 = vrot.slane %v1605_v37, 2 }
 0x90d   : > { %1608 = vrot.lane.b32.xlu1 %v1607_v40, %s3665_s29 }
 0x97f   : > { %v1609_v41 = vpop.permute.xlu1 %1608 }
 0x980   : > { %3294 = vmatmul.mubr.msk.bf16.vlgmr.msra.gmra.mxu1 %vm518_vm0, %v1609_v41 }
 0x981   : > { %3306 = vmatpush3.bf16.msra.mxu1 %v3912_v55  ;;  %3309 = vmatprep.mubr.msk.bf16.mxu1 %vm3661_vm2, %v3660_v52 }
 0x982   : > { %3307 = vmatprep.subr.bf16.mxu1 %v3660_v52 }
 0x985   : > { %3308 = vmatpush3.bf16.msra.mxu1 %v3919_v57 }
 0x986   : > { %3321 = vmatprep.subr.bf16.mxu1 %v3660_v52 }
 0xa40   : > { %v1647_v42 = vpop.f32.mrf.mxu1 }
 0xa41   : > { %v1654_v43 = vrot.slane %v1647_v42, 2 }
 0xa42   : > { %v3295_v38 = vpop.f32.mrf.mxu1 }
 0xa43   : > { %v1656_v44 = vadd.f32 %v1654_v43, %v3961_v30 }
 0xa44   : > { %v1650_v45 = vpop.f32.mrf.mxu1 }
 0xa45   : > { %3505 = vtanh.f32 %v1656_v44  ;;  %v3035_v48 = vmul.f32 -1.442695, %v1656_v44 }
 0xa46   : > { %v3296_v46 = vpop.f32.mrf.mxu1 }
 0xa47   : > { %3507 = vpow2.f32 %v3035_v48 }
 0xa52   : > { %v3506_v47 = vpop.eup %3505 }
 0xa53   : > { %1669 = vrot.lane.b32.xlu0 %v3506_v47, %s3664_s28 }
 0xa54   : > { %v3508_v49 = vpop.eup %3507 }
 0xa55   : > { %v1660_v50 = vadd.f32 1.0, %v3508_v49 }
 0xa57   : > { %3509 = vrcp.f32 %v1660_v50 }
 0xa64   : > { %v3510_v51 = vpop.eup %3509 }
 0xa65   : > { %v1667_v58 = vmul.f32 %v3510_v51, %v1665_v56 }
 0xac5   : > { %v1670_v53 = vpop.permute.xlu0 %1669 }
 0xac6   : > { %v1672_v54 = vmul.f32 %v3510_v51, %v1670_v53 }
 0xac8   : > { %1674 = vrot.lane.b32.xlu1 %v1672_v54, %s3665_s29 }
 0xb3a   : > { %v1675_v59 = vpop.permute.xlu1 %1674 }
 0xb3b   : > { %v1677_v30 = vadd.f32 %v1675_v59, %v1667_v58 }
 0xb3d   : > { %3511 = vtanh.f32 %v1677_v30  ;;  %v1741_v16 = vrot.slane %v1677_v30, 6 }
 0xb4a   : > { %v3512_v60 = vpop.eup %3511 }
 0xb4b   : > { %1680 = vrot.lane.b32.xlu0 %v3512_v60, %s3664_s28 }
 0xbbd   : > { %v1681_v61 = vpop.permute.xlu0 %1680 }
 0xbbe   : > { %v1683_v62 = vmul.f32 %v3510_v51, %v1681_v61 }
 0xbc0   : > { %v1684_v63 = vpack.c.bf16 %v1683_v62, %v1683_v62  ;;  %v4013_v0 = vsel %vm2000_vm5, %v1999_v39, %v1683_v62 }
 0xbc2   : > { %v1686_v1 = vrot.slane %v1684_v63, 3 }
 0xbc4   : > { %1687 = vrot.lane.b32.xlu1 %v1686_v1, %s3665_s29 }
 0xc36   : > { %v1688_v2 = vpop.permute.xlu1 %1687 }
 0xc37   : > { %3302 = vmatmul.mubr.msk.bf16.vlgmr.msra.gmra.mxu0 %vm518_vm0, %v1688_v2 }
 0xc38   : > { %3314 = vmatpush3.bf16.msra.mxu0 %v3912_v55  ;;  %3317 = vmatprep.mubr.msk.bf16.mxu0 %vm3661_vm2, %v3660_v52 }
 0xc39   : > { %3315 = vmatprep.subr.bf16.mxu0 %v3660_v52 }
 0xc3c   : > { %3316 = vmatpush3.bf16.msra.mxu0 %v3919_v57 }
 0xc3d   : > { %3329 = vmatprep.subr.bf16.mxu0 %v3660_v52 }
 0xcf7   : > { %v1726_v3 = vpop.f32.mrf.mxu0 }
 0xcf8   : > { %v1732_v4 = vadd.f32 %v1726_v3, %v3964_v34 }
 0xcf9   : > { %v3303_v5 = vpop.f32.mrf.mxu0 }
 0xcfa   : > { %3513 = vtanh.f32 %v1732_v4  ;;  %v3037_v10 = vmul.f32 -1.442695, %v1732_v4 }
 0xcfb   : > { %v1729_v6 = vpop.f32.mrf.mxu0 }
 0xcfc   : > { %3515 = vpow2.f32 %v3037_v10 }
 0xcfd   : > { %v3304_v8 = vpop.f32.mrf.mxu0 }
 0xd07   : > { %v3514_v9 = vpop.eup %3513 }
 0xd08   : > { %1745 = vrot.lane.b32.xlu0 %v3514_v9, %s3664_s28 }
 0xd09   : > { %v3516_v11 = vpop.eup %3515 }
 0xd0a   : > { %v1736_v12 = vadd.f32 1.0, %v3516_v11 }
 0xd0c   : > { %3517 = vrcp.f32 %v1736_v12 }
 0xd19   : > { %v3518_v13 = vpop.eup %3517 }
 0xd1a   : > { %v1743_v17 = vmul.f32 %v3518_v13, %v1741_v16 }
 0xd7a   : > { %v1746_v14 = vpop.permute.xlu0 %1745 }
 0xd7b   : > { %v1748_v15 = vmul.f32 %v3518_v13, %v1746_v14 }
 0xd7d   : > { %1750 = vrot.lane.b32.xlu1 %v1748_v15, %s3665_s29 }
 0xdef   : > { %v1751_v18 = vpop.permute.xlu1 %1750 }
 0xdf0   : > { %v1753_v19 = vadd.f32 %v1751_v18, %v1743_v17 }
 0xdf2   : > { %3519 = vtanh.f32 %v1753_v19  ;;  %v1819_v39 = vrot.slane %v1753_v19, 6 }
 0xdff   : > { %v3520_v20 = vpop.eup %3519 }
 0xe00   : > { %1756 = vrot.lane.b32.xlu0 %v3520_v20, %s3664_s28 }
 0xe72   : > { %v1757_v21 = vpop.permute.xlu0 %1756 }
 0xe73   : > { %v4027_v22 = vmul.f32 %v3518_v13, %v1757_v21 }
 0xe75   : > { %v1760_v23 = vpack.c.bf16 %v4027_v22, %v4027_v22 }
 0xe77   : > { %1762 = vrot.lane.b32.xlu1 %v1760_v23, %s3665_s29 }
 0xee9   : > { %v1763_v24 = vpop.permute.xlu1 %1762 }
 0xeea   : > { %3310 = vmatmul.mubr.msk.bf16.vlgmr.msra.gmra.mxu1 %vm518_vm0, %v1763_v24 }
 0xeeb   : > { %3322 = vmatpush3.bf16.msra.mxu1 %v3912_v55  ;;  %3325 = vmatprep.mubr.msk.bf16.mxu1 %vm3661_vm2, %v3660_v52 }
 0xeec   : > { %3323 = vmatprep.subr.bf16.mxu1 %v3660_v52 }
 0xeef   : > { %3324 = vmatpush3.bf16.msra.mxu1 %v3919_v57 }
 0xef0   : > { %3337 = vmatprep.subr.bf16.mxu1 %v3660_v52 }
 0xfaa   : > { %v1801_v25 = vpop.f32.mrf.mxu1 }
 0xfab   : > { %v1808_v26 = vrot.slane %v1801_v25, 6 }
 0xfac   : > { %v3311_v27 = vpop.f32.mrf.mxu1 }
 0xfad   : > { %v1810_v28 = vadd.f32 %v1808_v26, %v3964_v34 }
 0xfae   : > { %v1804_v29 = vpop.f32.mrf.mxu1 }
 0xfaf   : > { %3521 = vtanh.f32 %v1810_v28  ;;  %v3039_v55 = vmul.f32 -1.442695, %v1810_v28  ;;  %v4064_v29 = vld [vmem:[%s4239_s8 + $0x8] sm:$0xff]  }
 0xfb0   : > { %v3312_v31 = vpop.f32.mrf.mxu1 }
 0xfb1   : > { %3523 = vpow2.f32 %v3039_v55  ;;  %v3476_v31 = vld [vmem:[%s4238_s7 + $0x8] sm:$0xff]   ;;  %v3478_v55 = vld [vmem:[%s4238_s7] sm:$0xff]  }
 0xfbc   : > { %v3522_v32 = vpop.eup %3521 }
 0xfbd   : > { %1823 = vrot.lane.b32.xlu0 %v3522_v32, %s3664_s28  ;;  %v4073_v32 = vld [vmem:[%s4239_s8] sm:$0xff]  }
 0xfbe   : > { %v3524_v33 = vpop.eup %3523 }
 0xfbf   : > { %v1814_v35 = vadd.f32 1.0, %v3524_v33 }
 0xfc1   : > { %3525 = vrcp.f32 %v1814_v35 }
 0xfce   : > { %v3526_v36 = vpop.eup %3525 }
 0xfcf   : > { %v1821_v40 = vmul.f32 %v3526_v36, %v1819_v39 }
0x102f   : > { %v1824_v57 = vpop.permute.xlu0 %1823 }
0x1030   : > { %v1826_v37 = vmul.f32 %v3526_v36, %v1824_v57 }
0x1032   : > { %1828 = vrot.lane.b32.xlu1 %v1826_v37, %s3665_s29 }
0x10a4   : > { %v1829_v41 = vpop.permute.xlu1 %1828 }
0x10a5   : > { %v1831_v42 = vadd.f32 %v1829_v41, %v1821_v40 }
0x10a7   : > { %3527 = vtanh.f32 %v1831_v42  ;;  %v1898_v63 = vrot.slane %v1831_v42, 6 }
0x10b4   : > { %v3528_v43 = vpop.eup %3527 }
0x10b5   : > { %1834 = vrot.lane.b32.xlu0 %v3528_v43, %s3664_s28 }
0x1127   : > { %v1835_v38 = vpop.permute.xlu0 %1834 }
0x1128   : > { %v1837_v44 = vmul.f32 %v3526_v36, %v1835_v38 }
0x112a   : > { %v1838_v45 = vpack.c.bf16 %v1837_v44, %v1837_v44  ;;  %v2002_v8 = vsel %vm1996_vm3, %v4027_v22, %v1837_v44 }
0x112c   : > { %v1840_v46 = vrot.slane %v1838_v45, 1 }
0x112e   : > { %1841 = vrot.lane.b32.xlu1 %v1840_v46, %s3665_s29 }
0x11a0   : > { %v1842_v47 = vpop.permute.xlu1 %1841 }
0x11a1   : > { %3318 = vmatmul.mubr.msk.bf16.vlgmr.msra.gmra.mxu0 %vm518_vm0, %v1842_v47 }
0x11a2   : > { %3333 = vmatprep.mubr.msk.bf16.mxu0 %vm3661_vm2, %v3660_v52  ;;  %3330 = vmatpush3.bf16.msra.mxu0 %v3476_v31 }
0x11a3   : > { %3331 = vmatprep.subr.bf16.mxu0 %v3660_v52 }
0x11a6   : > { %3332 = vmatpush3.bf16.msra.mxu0 %v3478_v55 }
0x11a7   : > { %3345 = vmatprep.subr.bf16.mxu0 %v3660_v52 }
0x1261   : > { %v1880_v48 = vpop.f32.mrf.mxu0 }
0x1262   : > { %v1887_v49 = vrot.slane %v1880_v48, 4 }
0x1263   : > { %v3319_v50 = vpop.f32.mrf.mxu0 }
0x1264   : > { %v1889_v51 = vadd.f32 %v1887_v49, %v3964_v34 }
0x1265   : > { %v1883_v53 = vpop.f32.mrf.mxu0 }
0x1266   : > { %3529 = vtanh.f32 %v1889_v51  ;;  %v3041_v58 = vmul.f32 -1.442695, %v1889_v51 }
0x1267   : > { %v3320_v54 = vpop.f32.mrf.mxu0 }
0x1268   : > { %3531 = vpow2.f32 %v3041_v58 }
0x1273   : > { %v3530_v56 = vpop.eup %3529 }
0x1274   : > { %1902 = vrot.lane.b32.xlu0 %v3530_v56, %s3664_s28 }
0x1275   : > { %v3532_v59 = vpop.eup %3531 }
0x1276   : > { %v1893_v30 = vadd.f32 1.0, %v3532_v59 }
0x1278   : > { %3533 = vrcp.f32 %v1893_v30 }
0x1285   : > { %v3534_v60 = vpop.eup %3533 }
0x1286   : > { %v1900_v1 = vmul.f32 %v3534_v60, %v1898_v63 }
0x12e6   : > { %v1903_v61 = vpop.permute.xlu0 %1902 }
0x12e7   : > { %v1905_v62 = vmul.f32 %v3534_v60, %v1903_v61 }
0x12e9   : > { %1907 = vrot.lane.b32.xlu1 %v1905_v62, %s3665_s29 }
0x135b   : > { %v1908_v2 = vpop.permute.xlu1 %1907 }
0x135c   : > { %v1910_v3 = vadd.f32 %v1908_v2, %v1900_v1 }
0x135e   : > { %3535 = vtanh.f32 %v1910_v3  ;;  %v1977_v26 = vrot.slane %v1910_v3, 6 }
0x136b   : > { %v3536_v4 = vpop.eup %3535 }
0x136c   : > { %1913 = vrot.lane.b32.xlu0 %v3536_v4, %s3664_s28 }
0x13de   : > { %v1914_v5 = vpop.permute.xlu0 %1913 }
0x13df   : > { %v1916_v6 = vmul.f32 %v3534_v60, %v1914_v5 }
0x13e1   : > { %v1917_v9 = vpack.c.bf16 %v1916_v6, %v1916_v6  ;;  %v2003_v10 = vsel %vm1998_vm4, %v2002_v8, %v1916_v6 }
0x13e3   : > { %v1919_v11 = vrot.slane %v1917_v9, 2 }
0x13e5   : > { %1920 = vrot.lane.b32.xlu1 %v1919_v11, %s3665_s29 }
0x1457   : > { %v1921_v12 = vpop.permute.xlu1 %1920 }
0x1458   : > { %3326 = vmatmul.mubr.msk.bf16.vlgmr.msra.gmra.mxu1 %vm518_vm0, %v1921_v12 }
0x1459   : > { %3341 = vmatprep.mubr.msk.bf16.mxu1 %vm3661_vm2, %v3660_v52  ;;  %3338 = vmatpush3.bf16.msra.mxu1 %v4064_v29 }
0x145a   : > { %3339 = vmatprep.subr.bf16.mxu1 %v3660_v52 }
0x145d   : > { %3340 = vmatpush3.bf16.msra.mxu1 %v4073_v32 }
0x145e   : > { %3353 = vmatprep.subr.bf16.mxu1 %v3660_v52 }
0x1460   : > { %3342 = vmatmul.mubr.bf16.vlgmr.msra.gmra.mxu1 %v3663_v7 }
0x1461   : > { %3354 = vmatpush3.bf16.msra.mxu1 %v4064_v29  ;;  %3357 = vmatprep.mubr.msk.bf16.mxu1 %vm3661_vm2, %v3660_v52 }
0x1462   : > { %3355 = vmatprep.subr.bf16.mxu1 %v3660_v52 }
0x1465   : > { %3356 = vmatpush3.bf16.msra.mxu1 %v4073_v32 }
0x1466   : > { %3369 = vmatprep.subr.bf16.mxu1 %v3660_v52 }
0x1518   : > { %v1959_v13 = vpop.f32.mrf.mxu1 }
0x1519   : > { %v1966_v14 = vrot.slane %v1959_v13, 2 }
0x151a   : > { %v3327_v15 = vpop.f32.mrf.mxu1 }
0x151b   : > { %v1968_v16 = vadd.f32 %v1966_v14, %v3964_v34 }
0x151c   : > { %v1962_v17 = vpop.f32.mrf.mxu1 }
0x151d   : > { %3537 = vtanh.f32 %v1968_v16  ;;  %v3043_v20 = vmul.f32 -1.442695, %v1968_v16 }
0x151e   : > { %v3328_v18 = vpop.f32.mrf.mxu1 }
0x151f   : > { %3539 = vpow2.f32 %v3043_v20 }
0x1520   : > { %v2126_v7 = vpop.f32.mrf.mxu1 }
0x1522   : > { %v3343_v39 = vpop.f32.mrf.mxu1 }
0x1524   : > { %v2129_v40 = vpop.f32.mrf.mxu1 }
0x1526   : > { %v3344_v41 = vpop.f32.mrf.mxu1 }
0x152a   : > { %v3538_v19 = vpop.eup %3537 }
0x152b   : > { %1981 = vrot.lane.b32.xlu0 %v3538_v19, %s3664_s28 }
0x152c   : > { %v3540_v21 = vpop.eup %3539 }
0x152d   : > { %v1972_v22 = vadd.f32 1.0, %v3540_v21 }
0x152f   : > { %3541 = vrcp.f32 %v1972_v22  ;;  %v2708_v22 = vstv %s2707_s24 }
0x1530   : > { %vm2709_vm6 = vcmp.eq.s32.totalorder %v2708_v22, 1 }
0x153c   : > { %v3542_v23 = vpop.eup %3541 }
0x153d   : > { %v1979_v27 = vmul.f32 %v3542_v23, %v1977_v26 }
0x159d   : > { %v1982_v24 = vpop.permute.xlu0 %1981 }
0x159e   : > { %v1984_v25 = vmul.f32 %v3542_v23, %v1982_v24 }
0x15a0   : > { %1986 = vrot.lane.b32.xlu1 %v1984_v25, %s3665_s29 }
0x1612   : > { %v1987_v28 = vpop.permute.xlu1 %1986 }
0x1613   : > { %v1989_v34 = vadd.f32 %v1987_v28, %v1979_v27 }
0x1615   : > { %3543 = vtanh.f32 %v1989_v34 }
0x1622   : > { %v3544_v33 = vpop.eup %3543 }
0x1623   : > { %1992 = vrot.lane.b32.xlu0 %v3544_v33, %s3664_s28 }
0x1695   : > { %v1993_v35 = vpop.permute.xlu0 %1992 }
0x1696   : > { %v1995_v36 = vmul.f32 %v3542_v23, %v1993_v35  ;;  %v2765_v23 = vstv %s2764_s25 }
0x1697   : > { %vm2766_vm7 = vcmp.eq.s32.totalorder %v2765_v23, 1 }
0x1698   : > { %v2004_v57 = vsel %vm2000_vm5, %v2003_v10, %v1995_v36 }
0x1699   : > { %v2014_v37 = vpack.c.bf16 %v2004_v57, %v4013_v0  ;;  %v3044_v0 = vld [vmem:[%s4240_s9] ss:$0 sm:$0xff] }
0x169b   : > { %2022 = vrot.lane.b32.xlu1 %v2014_v37, %s3665_s29 }
0x170d   : > { %v2023_v42 = vpop.permute.xlu1 %2022 }
0x170e   : > { %3334 = vmatmul.mubr.msk.bf16.vlgmr.msra.gmra.mxu0 %vm518_vm0, %v2023_v42 }
0x170f   : > { %3346 = vmatpush3.bf16.msra.mxu0 %v4064_v29  ;;  %3349 = vmatprep.mubr.msk.bf16.mxu0 %vm3661_vm2, %v3660_v52 }
0x1710   : > { %3347 = vmatprep.subr.bf16.mxu0 %v3660_v52 }
0x1713   : > { %3348 = vmatpush3.bf16.msra.mxu0 %v4073_v32 }
0x1714   : > { %3361 = vmatprep.subr.bf16.mxu0 %v3660_v52 }
0x17ce   : > { %v2073_v43 = vpop.f32.mrf.mxu0 }
0x17cf   : > { %v4104_v38 = vadd.f32 %v3044_v0, %v2073_v43 }
0x17d0   : > { %v3335_v44 = vpop.f32.mrf.mxu0 }
0x17d1   : > { %v2132_v45 = vadd.f32 %v2126_v7, %v4104_v38 }
0x17d2   : > { %v2076_v46 = vpop.f32.mrf.mxu0 }
0x17d3   : > { %3545 = vtanh.f32 %v2132_v45  ;;  %v4107_v47 = vadd.f32 %v3044_v0, %v2076_v46  ;;  %v3050_v50 = vmul.f32 -1.442695, %v2132_v45 }
0x17d4   : > { %v3336_v48 = vpop.f32.mrf.mxu0 }
0x17d5   : > { %3547 = vpow2.f32 %v3050_v50 }
0x17e0   : > { %v3546_v49 = vpop.eup %3545 }
0x17e1   : > { %2142 = vrot.lane.b32.xlu0 %v3546_v49, %s3664_s28 }
0x17e2   : > { %v3548_v51 = vpop.eup %3547 }
0x17e3   : > { %v2136_v53 = vadd.f32 1.0, %v3548_v51  ;;  %v2716_v51 = vstv %s2715_s27 }
0x17e4   : > { %vm2717_vm8 = vcmp.eq.s32.totalorder %v2716_v51, 1 }
0x17e5   : > { %3549 = vrcp.f32 %v2136_v53  ;;  %v2770_v53 = vstv %s2769_s30  ;;  %s2755_s30 = scalar_select %p2754_p8, 1, 0 }
0x17e6   : > { %vm2771_vm9 = vcmp.eq.s32.totalorder %v2770_v53, 1 }
0x17f2   : > { %v3550_v54 = vpop.eup %3549 }
0x17f3   : > { %v2140_v59 = vmul.f32 0.0, %v3550_v54 }
0x1853   : > { %v2143_v56 = vpop.permute.xlu0 %2142 }
0x1854   : > { %v2145_v58 = vmul.f32 %v3550_v54, %v2143_v56 }
0x1856   : > { %2147 = vrot.lane.b32.xlu1 %v2145_v58, %s3665_s29 }
0x18c8   : > { %v2148_v30 = vpop.permute.xlu1 %2147 }
0x18c9   : > { %v2150_v60 = vadd.f32 %v2148_v30, %v2140_v59 }
0x18cb   : > { %3551 = vtanh.f32 %v2150_v60  ;;  %v2216_v17 = vrot.slane %v2150_v60, 6 }
0x18d8   : > { %v3552_v61 = vpop.eup %3551 }
0x18d9   : > { %2153 = vrot.lane.b32.xlu0 %v3552_v61, %s3664_s28 }
0x194b   : > { %v2154_v62 = vpop.permute.xlu0 %2153 }
0x194c   : > { %v2156_v63 = vmul.f32 %v3550_v54, %v2154_v62 }
0x194e   : > { %v2157_v1 = vpack.c.bf16 %v2156_v63, %v2156_v63  ;;  %v2711_v25 = vrot.slane %v2156_v63, 6 }
0x1950   : > { %2159 = vrot.lane.b32.xlu1 %v2157_v1, %s3665_s29 }
0x19c2   : > { %v2160_v2 = vpop.permute.xlu1 %2159 }
0x19c3   : > { %3350 = vmatmul.mubr.msk.bf16.vlgmr.msra.gmra.mxu0 %vm518_vm0, %v2160_v2 }
0x19c4   : > { %3362 = vmatpush3.bf16.msra.mxu0 %v4064_v29  ;;  %3365 = vmatprep.mubr.msk.bf16.mxu0 %vm3661_vm2, %v3660_v52 }
0x19c5   : > { %3363 = vmatprep.subr.bf16.mxu0 %v3660_v52 }
0x19c8   : > { %3364 = vmatpush3.bf16.msra.mxu0 %v4073_v32 }
0x19c9   : > { %3377 = vmatprep.subr.bf16.mxu0 %v3660_v52 }
0x1a83   : > { %v2198_v3 = vpop.f32.mrf.mxu0 }
0x1a84   : > { %v2205_v4 = vrot.slane %v2198_v3, 6 }
0x1a85   : > { %v3351_v5 = vpop.f32.mrf.mxu0 }
0x1a86   : > { %v2207_v6 = vadd.f32 %v2205_v4, %v4104_v38 }
0x1a87   : > { %v2201_v8 = vpop.f32.mrf.mxu0 }
0x1a88   : > { %3553 = vtanh.f32 %v2207_v6  ;;  %v3052_v11 = vmul.f32 -1.442695, %v2207_v6 }
0x1a89   : > { %v3352_v9 = vpop.f32.mrf.mxu0 }
0x1a8a   : > { %3555 = vpow2.f32 %v3052_v11 }
0x1a95   : > { %v3554_v10 = vpop.eup %3553 }
0x1a96   : > { %2220 = vrot.lane.b32.xlu0 %v3554_v10, %s3664_s28 }
0x1a97   : > { %v3556_v12 = vpop.eup %3555 }
0x1a98   : > { %v2211_v13 = vadd.f32 1.0, %v3556_v12 }
0x1a9a   : > { %3557 = vrcp.f32 %v2211_v13 }
0x1aa7   : > { %v3558_v14 = vpop.eup %3557 }
0x1aa8   : > { %v2218_v18 = vmul.f32 %v3558_v14, %v2216_v17 }
0x1b08   : > { %v2221_v15 = vpop.permute.xlu0 %2220 }
0x1b09   : > { %v2223_v16 = vmul.f32 %v3558_v14, %v2221_v15 }
0x1b0b   : > { %2225 = vrot.lane.b32.xlu1 %v2223_v16, %s3665_s29 }
0x1b7d   : > { %v2226_v19 = vpop.permute.xlu1 %2225 }
0x1b7e   : > { %v2228_v20 = vadd.f32 %v2226_v19, %v2218_v18  ;;  %v2724_v19 = vstv %s2723_s13  ;;  %s2809_s13 = scalar_select %p2808_p9, 1, 0 }
0x1b7f   : > { %vm2725_vm10 = vcmp.eq.s32.totalorder %v2724_v19, 1 }
0x1b80   : > { %3559 = vtanh.f32 %v2228_v20  ;;  %v2295_v45 = vrot.slane %v2228_v20, 6  ;;  %v2778_v20 = vstv %s2777_s14 }
0x1b81   : > { %vm2779_vm11 = vcmp.eq.s32.totalorder %v2778_v20, 1 }
0x1b8d   : > { %v3560_v21 = vpop.eup %3559 }
0x1b8e   : > { %2231 = vrot.lane.b32.xlu0 %v3560_v21, %s3664_s28 }
0x1c00   : > { %v2232_v24 = vpop.permute.xlu0 %2231 }
0x1c01   : > { %v2234_v26 = vmul.f32 %v3558_v14, %v2232_v24 }
0x1c03   : > { %v2713_v27 = vsel %vm2709_vm6, %v2234_v26, %v2711_v25  ;;  %v2767_v28 = vsel %vm2766_vm7, %v2234_v26, %v2711_v25  ;;  %v2235_v34 = vpack.c.bf16 %v2234_v26, %v2234_v26  ;;  %vm2893_vm6 = vcmask 58368  }
0x1c04   : > { %v2719_v56 = vrot.slane %v2713_v27, 6  ;;  %v2773_v58 = vrot.slane %v2767_v28, 6 }
0x1c05   : > { %v2237_v31 = vrot.slane %v2235_v34, 1 }
0x1c07   : > { %2238 = vrot.lane.b32.xlu1 %v2237_v31, %s3665_s29 }
0x1c79   : > { %v2239_v55 = vpop.permute.xlu1 %2238 }
0x1c7a   : > { %3358 = vmatmul.mubr.msk.bf16.vlgmr.msra.gmra.mxu1 %vm518_vm0, %v2239_v55 }
0x1c7b   : > { %3370 = vmatpush3.bf16.msra.mxu1 %v4064_v29  ;;  %3373 = vmatprep.mubr.msk.bf16.mxu1 %vm3661_vm2, %v3660_v52 }
0x1c7c   : > { %3371 = vmatprep.subr.bf16.mxu1 %v3660_v52 }
0x1c7f   : > { %3372 = vmatpush3.bf16.msra.mxu1 %v4073_v32 }
0x1c80   : > { %3385 = vmatprep.subr.bf16.mxu1 %v3660_v52 }
0x1d3a   : > { %v2277_v33 = vpop.f32.mrf.mxu1 }
0x1d3b   : > { %v2284_v35 = vrot.slane %v2277_v33, 4 }
0x1d3c   : > { %v3359_v36 = vpop.f32.mrf.mxu1 }
0x1d3d   : > { %v2286_v57 = vadd.f32 %v2284_v35, %v4104_v38 }
0x1d3e   : > { %v2280_v37 = vpop.f32.mrf.mxu1 }
0x1d3f   : > { %3561 = vtanh.f32 %v2286_v57  ;;  %v3054_v40 = vmul.f32 -1.442695, %v2286_v57 }
0x1d40   : > { %v3360_v7 = vpop.f32.mrf.mxu1 }
0x1d41   : > { %3563 = vpow2.f32 %v3054_v40 }
0x1d4c   : > { %v3562_v39 = vpop.eup %3561 }
0x1d4d   : > { %2299 = vrot.lane.b32.xlu0 %v3562_v39, %s3664_s28 }
0x1d4e   : > { %v3564_v41 = vpop.eup %3563 }
0x1d4f   : > { %v2290_v42 = vadd.f32 1.0, %v3564_v41 }
0x1d51   : > { %3565 = vrcp.f32 %v2290_v42 }
0x1d5e   : > { %v3566_v0 = vpop.eup %3565 }
0x1d5f   : > { %v2297_v46 = vmul.f32 %v3566_v0, %v2295_v45 }
0x1dbf   : > { %v2300_v43 = vpop.permute.xlu0 %2299 }
0x1dc0   : > { %v2302_v44 = vmul.f32 %v3566_v0, %v2300_v43 }
0x1dc2   : > { %2304 = vrot.lane.b32.xlu1 %v2302_v44, %s3665_s29 }
0x1e34   : > { %v2305_v48 = vpop.permute.xlu1 %2304 }
0x1e35   : > { %v2307_v49 = vadd.f32 %v2305_v48, %v2297_v46  ;;  %v2732_v48 = vstv %s2731_s15 }
0x1e36   : > { %vm2733_vm12 = vcmp.eq.s32.totalorder %v2732_v48, 1 }
0x1e37   : > { %3567 = vtanh.f32 %v2307_v49  ;;  %v2374_v15 = vrot.slane %v2307_v49, 6  ;;  %v2786_v49 = vstv %s2785_s16 }
0x1e38   : > { %vm2787_vm13 = vcmp.eq.s32.totalorder %v2786_v49, 1 }
0x1e44   : > { %v3568_v50 = vpop.eup %3567 }
0x1e45   : > { %2310 = vrot.lane.b32.xlu0 %v3568_v50, %s3664_s28 }
0x1eb7   : > { %v2311_v54 = vpop.permute.xlu0 %2310 }
0x1eb8   : > { %v2313_v59 = vmul.f32 %v3566_v0, %v2311_v54 }
0x1eba   : > { %v2721_v30 = vsel %vm2717_vm8, %v2313_v59, %v2719_v56  ;;  %v2775_v60 = vsel %vm2771_vm9, %v2313_v59, %v2773_v58  ;;  %v2314_v61 = vpack.c.bf16 %v2313_v59, %v2313_v59 }
0x1ebb   : > { %v2727_v22 = vrot.slane %v2721_v30, 6  ;;  %v2781_v23 = vrot.slane %v2775_v60, 6 }
0x1ebc   : > { %v2316_v62 = vrot.slane %v2314_v61, 2 }
0x1ebe   : > { %2317 = vrot.lane.b32.xlu1 %v2316_v62, %s3665_s29 }
0x1f30   : > { %v2318_v63 = vpop.permute.xlu1 %2317 }
0x1f31   : > { %3366 = vmatmul.mubr.msk.bf16.vlgmr.msra.gmra.mxu0 %vm518_vm0, %v2318_v63 }
0x1f32   : > { %3378 = vmatpush3.bf16.msra.mxu0 %v4064_v29  ;;  %3381 = vmatprep.mubr.msk.bf16.mxu0 %vm3661_vm2, %v3660_v52 }
0x1f33   : > { %3379 = vmatprep.subr.bf16.mxu0 %v3660_v52 }
0x1f36   : > { %3380 = vmatpush3.bf16.msra.mxu0 %v4073_v32 }
0x1f37   : > { %3393 = vmatprep.subr.bf16.mxu0 %v3660_v52 }
0x1ff1   : > { %v2356_v1 = vpop.f32.mrf.mxu0 }
0x1ff2   : > { %v2363_v2 = vrot.slane %v2356_v1, 2 }
0x1ff3   : > { %v3367_v3 = vpop.f32.mrf.mxu0 }
0x1ff4   : > { %v2365_v4 = vadd.f32 %v2363_v2, %v4104_v38 }
0x1ff5   : > { %v2359_v5 = vpop.f32.mrf.mxu0 }
0x1ff6   : > { %3569 = vtanh.f32 %v2365_v4  ;;  %v3056_v9 = vmul.f32 -1.442695, %v2365_v4 }
0x1ff7   : > { %v3368_v6 = vpop.f32.mrf.mxu0 }
0x1ff8   : > { %3571 = vpow2.f32 %v3056_v9 }
0x2003   : > { %v3570_v8 = vpop.eup %3569 }
0x2004   : > { %2378 = vrot.lane.b32.xlu0 %v3570_v8, %s3664_s28 }
0x2005   : > { %v3572_v10 = vpop.eup %3571 }
0x2006   : > { %v2369_v11 = vadd.f32 1.0, %v3572_v10 }
0x2008   : > { %3573 = vrcp.f32 %v2369_v11 }
0x2015   : > { %v3574_v12 = vpop.eup %3573 }
0x2016   : > { %v2376_v38 = vmul.f32 %v3574_v12, %v2374_v15  ;;  %v2794_v15 = vstv %s2793_s18 }
0x2017   : > { %vm2795_vm15 = vcmp.eq.s32.totalorder %v2794_v15, 1 }
0x2076   : > { %v2379_v13 = vpop.permute.xlu0 %2378 }
0x2077   : > { %v2381_v14 = vmul.f32 %v3574_v12, %v2379_v13 }
0x2079   : > { %2383 = vrot.lane.b32.xlu1 %v2381_v14, %s3665_s29  ;;  %v2740_v14 = vstv %s2739_s17 }
0x207a   : > { %vm2741_vm14 = vcmp.eq.s32.totalorder %v2740_v14, 1 }
0x20eb   : > { %v2384_v16 = vpop.permute.xlu1 %2383 }
0x20ec   : > { %v2386_v17 = vadd.f32 %v2384_v16, %v2376_v38 }
0x20ee   : > { %3575 = vtanh.f32 %v2386_v17  ;;  %v2450_v0 = vrot.slane %v2386_v17, 6 }
0x20fb   : > { %v3576_v18 = vpop.eup %3575 }
0x20fc   : > { %2389 = vrot.lane.b32.xlu0 %v3576_v18, %s3664_s28 }
0x216e   : > { %v2390_v21 = vpop.permute.xlu0 %2389 }
0x216f   : > { %v2392_v24 = vmul.f32 %v3574_v12, %v2390_v21 }
0x2171   : > { %v2729_v25 = vsel %vm2725_vm10, %v2392_v24, %v2727_v22  ;;  %v2783_v26 = vsel %vm2779_vm11, %v2392_v24, %v2781_v23  ;;  %v2393_v27 = vpack.c.bf16 %v2392_v24, %v2392_v24 }
0x2172   : > { %v2735_v51 = vrot.slane %v2729_v25, 6  ;;  %v2789_v53 = vrot.slane %v2783_v26, 6 }
0x2173   : > { %v2395_v28 = vrot.slane %v2393_v27, 3 }
0x2175   : > { %2396 = vrot.lane.b32.xlu1 %v2395_v28, %s3665_s29 }
0x21e7   : > { %v2397_v34 = vpop.permute.xlu1 %2396 }
0x21e8   : > { %3374 = vmatmul.mubr.msk.bf16.vlgmr.msra.gmra.mxu1 %vm518_vm0, %v2397_v34 }
0x21e9   : > { %3386 = vmatpush3.bf16.msra.mxu1 %v4064_v29  ;;  %3389 = vmatprep.mubr.msk.bf16.mxu1 %vm3661_vm2, %v3660_v52 }
0x21ea   : > { %3387 = vmatprep.subr.bf16.mxu1 %v3660_v52 }
0x21ed   : > { %3388 = vmatpush3.bf16.msra.mxu1 %v4073_v32 }
0x21ee   : > { %3401 = vmatprep.subr.bf16.mxu1 %v3660_v52 }
0x22a8   : > { %v2435_v31 = vpop.f32.mrf.mxu1 }
0x22a9   : > { %v2441_v55 = vadd.f32 %v2435_v31, %v4107_v47 }
0x22aa   : > { %v3375_v33 = vpop.f32.mrf.mxu1 }
0x22ab   : > { %3577 = vtanh.f32 %v2441_v55  ;;  %v3058_v37 = vmul.f32 -1.442695, %v2441_v55 }
0x22ac   : > { %v2438_v35 = vpop.f32.mrf.mxu1 }
0x22ad   : > { %3579 = vpow2.f32 %v3058_v37 }
0x22ae   : > { %v3376_v36 = vpop.f32.mrf.mxu1 }
0x22b8   : > { %v3578_v57 = vpop.eup %3577 }
0x22b9   : > { %2454 = vrot.lane.b32.xlu0 %v3578_v57, %s3664_s28 }
0x22ba   : > { %v3580_v7 = vpop.eup %3579 }
0x22bb   : > { %v2445_v39 = vadd.f32 1.0, %v3580_v7 }
0x22bd   : > { %3581 = vrcp.f32 %v2445_v39 }
0x22ca   : > { %v3582_v40 = vpop.eup %3581 }
0x22cb   : > { %v2452_v43 = vmul.f32 %v3582_v40, %v2450_v0  ;;  %v2748_v0 = vstv %s2747_s19 }
0x232b   : > { %v2455_v41 = vpop.permute.xlu0 %2454 }
0x232c   : > { %v2457_v42 = vmul.f32 %v3582_v40, %v2455_v41 }
0x232e   : > { %2459 = vrot.lane.b32.xlu1 %v2457_v42, %s3665_s29 }
0x23a0   : > { %v2460_v44 = vpop.permute.xlu1 %2459 }
0x23a1   : > { %v2462_v45 = vadd.f32 %v2460_v44, %v2452_v43  ;;  %v2802_v43 = vstv %s2801_s20 }
0x23a2   : > { %vm2803_vm3 = vcmp.eq.s32.totalorder %v2802_v43, 1 }
0x23a3   : > { %3583 = vtanh.f32 %v2462_v45  ;;  %v2528_v9 = vrot.slane %v2462_v45, 6 }
0x23b0   : > { %v3584_v46 = vpop.eup %3583 }
0x23b1   : > { %2465 = vrot.lane.b32.xlu0 %v3584_v46, %s3664_s28 }
0x2423   : > { %v2466_v50 = vpop.permute.xlu0 %2465 }
0x2424   : > { %v2468_v54 = vmul.f32 %v3582_v40, %v2466_v50 }
0x2426   : > { %v2737_v56 = vsel %vm2733_vm12, %v2468_v54, %v2735_v51  ;;  %v2791_v58 = vsel %vm2787_vm13, %v2468_v54, %v2789_v53  ;;  %v2469_v59 = vpack.c.bf16 %v2468_v54, %v2468_v54 }
0x2427   : > { %v2743_v16 = vrot.slane %v2737_v56, 6  ;;  %v2797_v17 = vrot.slane %v2791_v58, 6 }
0x2428   : > { %2471 = vrot.lane.b32.xlu1 %v2469_v59, %s3665_s29 }
0x249a   : > { %v2472_v30 = vpop.permute.xlu1 %2471 }
0x249b   : > { %3382 = vmatmul.mubr.msk.bf16.vlgmr.msra.gmra.mxu0 %vm518_vm0, %v2472_v30 }
0x249c   : > { %3394 = vmatpush3.bf16.msra.mxu0 %v4064_v29  ;;  %3397 = vmatprep.mubr.msk.bf16.mxu0 %vm3661_vm2, %v3660_v52 }
0x249d   : > { %3395 = vmatprep.subr.bf16.mxu0 %v3660_v52 }
0x24a0   : > { %3396 = vmatpush3.bf16.msra.mxu0 %v4073_v32 }
0x255b   : > { %v2510_v60 = vpop.f32.mrf.mxu0 }
0x255c   : > { %v2517_v61 = vrot.slane %v2510_v60, 6 }
0x255d   : > { %v3383_v62 = vpop.f32.mrf.mxu0 }
0x255e   : > { %v2519_v63 = vadd.f32 %v2517_v61, %v4107_v47 }
0x255f   : > { %v2513_v1 = vpop.f32.mrf.mxu0 }
0x2560   : > { %3585 = vtanh.f32 %v2519_v63  ;;  %v3060_v4 = vmul.f32 -1.442695, %v2519_v63 }
0x2561   : > { %v3384_v2 = vpop.f32.mrf.mxu0 }
0x2562   : > { %3587 = vpow2.f32 %v3060_v4 }
0x256d   : > { %v3586_v3 = vpop.eup %3585 }
0x256e   : > { %2532 = vrot.lane.b32.xlu0 %v3586_v3, %s3664_s28 }
0x256f   : > { %v3588_v29 = vpop.eup %3587 }
0x2570   : > { %v2523_v5 = vadd.f32 1.0, %v3588_v29 }
0x2572   : > { %3589 = vrcp.f32 %v2523_v5 }
0x257f   : > { %v3590_v6 = vpop.eup %3589 }
0x2580   : > { %v2530_v10 = vmul.f32 %v3590_v6, %v2528_v9  ;;  %v3480_v9 = vld [vmem:[%s4241_s10] sm:$0xff]  }
0x25e0   : > { %v2533_v32 = vpop.permute.xlu0 %2532 }
0x25e1   : > { %v2535_v8 = vmul.f32 %v3590_v6, %v2533_v32 }
0x25e3   : > { %2537 = vrot.lane.b32.xlu1 %v2535_v8, %s3665_s29  ;;  %v3479_v8 = vld [vmem:[%s4241_s10 + $0x8] sm:$0xff]  }
0x2655   : > { %v2538_v11 = vpop.permute.xlu1 %2537 }
0x2656   : > { %v2540_v12 = vadd.f32 %v2538_v11, %v2530_v10  ;;  %v2756_v11 = vstv %s2755_s30 }
0x2657   : > { %vm2757_vm4 = vcmp.eq.s32.totalorder %v2756_v11, 1 }
0x2658   : > { %3591 = vtanh.f32 %v2540_v12  ;;  %v2607_v7 = vrot.slane %v2540_v12, 6  ;;  %v2810_v12 = vstv %s2809_s13 }
0x2659   : > { %vm2811_vm5 = vcmp.eq.s32.totalorder %v2810_v12, 1 }
0x2665   : > { %v3592_v13 = vpop.eup %3591 }
0x2666   : > { %2543 = vrot.lane.b32.xlu0 %v3592_v13, %s3664_s28 }
0x26d8   : > { %v2544_v38 = vpop.permute.xlu0 %2543 }
0x26d9   : > { %v2546_v18 = vmul.f32 %v3590_v6, %v2544_v38 }
0x26db   : > { %v2745_v19 = vsel %vm2741_vm14, %v2546_v18, %v2743_v16  ;;  %v2799_v20 = vsel %vm2795_vm15, %v2546_v18, %v2797_v17  ;;  %v2547_v21 = vpack.c.bf16 %v2546_v18, %v2546_v18 }
0x26dc   : > { %v2751_v45 = vrot.slane %v2745_v19, 6  ;;  %v2805_v46 = vrot.slane %v2799_v20, 6 }
0x26dd   : > { %v2549_v22 = vrot.slane %v2547_v21, 1 }
0x26df   : > { %2550 = vrot.lane.b32.xlu1 %v2549_v22, %s3665_s29  ;;  %v3066_v22 = vld [vmem:[%s4242_s11] ss:$0 sm:$0xff] }
0x2751   : > { %v2551_v23 = vpop.permute.xlu1 %2550 }
0x2752   : > { %3390 = vmatmul.mubr.msk.bf16.vlgmr.msra.gmra.mxu1 %vm518_vm0, %v2551_v23 }
0x2753   : > { %3405 = vmatprep.mubr.msk.bf16.mxu1 %vm3661_vm2, %v3660_v52  ;;  %vm2749_vm2 = vcmp.eq.s32.totalorder %v2748_v0, 1  ;;  %3402 = vmatpush3.bf16.msra.mxu1 %v3479_v8 }
0x2754   : > { %3403 = vmatprep.subr.bf16.mxu1 %v3660_v52 }
0x2757   : > { %3404 = vmatpush3.bf16.msra.mxu1 %v3480_v9 }
0x2812   : > { %v2589_v24 = vpop.f32.mrf.mxu1 }
0x2813   : > { %v2596_v25 = vrot.slane %v2589_v24, 4 }
0x2814   : > { %v3391_v26 = vpop.f32.mrf.mxu1 }
0x2815   : > { %v2598_v27 = vadd.f32 %v2596_v25, %v4107_v47 }
0x2816   : > { %v2592_v28 = vpop.f32.mrf.mxu1 }
0x2817   : > { %3593 = vtanh.f32 %v2598_v27  ;;  %v3062_v55 = vmul.f32 -1.442695, %v2598_v27 }
0x2818   : > { %v3392_v34 = vpop.f32.mrf.mxu1 }
0x2819   : > { %3595 = vpow2.f32 %v3062_v55 }
0x2824   : > { %v3594_v31 = vpop.eup %3593 }
0x2825   : > { %2611 = vrot.lane.b32.xlu0 %v3594_v31, %s3664_s28 }
0x2826   : > { %v3596_v33 = vpop.eup %3595 }
0x2827   : > { %v2602_v35 = vadd.f32 1.0, %v3596_v33 }
0x2829   : > { %3597 = vrcp.f32 %v2602_v35 }
0x2836   : > { %v3598_v36 = vpop.eup %3597 }
0x2837   : > { %v2609_v39 = vmul.f32 %v3598_v36, %v2607_v7 }
0x2897   : > { %v2612_v57 = vpop.permute.xlu0 %2611 }
0x2898   : > { %v2614_v37 = vmul.f32 %v3598_v36, %v2612_v57 }
0x289a   : > { %2616 = vrot.lane.b32.xlu1 %v2614_v37, %s3665_s29 }
0x290c   : > { %v2617_v40 = vpop.permute.xlu1 %2616 }
0x290d   : > { %v2619_v41 = vadd.f32 %v2617_v40, %v2609_v39 }
0x290f   : > { %3599 = vtanh.f32 %v2619_v41  ;;  %v2686_v5 = vrot.slane %v2619_v41, 6 }
0x291c   : > { %v3600_v42 = vpop.eup %3599 }
0x291d   : > { %2622 = vrot.lane.b32.xlu0 %v3600_v42, %s3664_s28 }
0x298f   : > { %v2623_v44 = vpop.permute.xlu0 %2622 }
0x2990   : > { %v2625_v48 = vmul.f32 %v3598_v36, %v2623_v44 }
0x2992   : > { %v2753_v49 = vsel %vm2749_vm2, %v2625_v48, %v2751_v45  ;;  %v2807_v50 = vsel %vm2803_vm3, %v2625_v48, %v2805_v46  ;;  %v2626_v51 = vpack.c.bf16 %v2625_v48, %v2625_v48 }
0x2993   : > { %v2759_v14 = vrot.slane %v2753_v49, 6  ;;  %v2813_v15 = vrot.slane %v2807_v50, 6 }
0x2994   : > { %v2628_v53 = vrot.slane %v2626_v51, 2 }
0x2996   : > { %2629 = vrot.lane.b32.xlu1 %v2628_v53, %s3665_s29 }
0x2a08   : > { %v2630_v54 = vpop.permute.xlu1 %2629 }
0x2a09   : > { %3398 = vmatmul.mubr.msk.bf16.vlgmr.msra.gmra.mxu0 %vm518_vm0, %v2630_v54 }
0x2ac9   : > { %v2668_v56 = vpop.f32.mrf.mxu0 }
0x2aca   : > { %v2675_v58 = vrot.slane %v2668_v56, 2 }
0x2acb   : > { %v3399_v59 = vpop.f32.mrf.mxu0 }
0x2acc   : > { %v2677_v30 = vadd.f32 %v2675_v58, %v4107_v47 }
0x2acd   : > { %v2671_v60 = vpop.f32.mrf.mxu0 }
0x2ace   : > { %3601 = vtanh.f32 %v2677_v30  ;;  %v3064_v63 = vmul.f32 -1.442695, %v2677_v30 }
0x2acf   : > { %v3400_v61 = vpop.f32.mrf.mxu0 }
0x2ad0   : > { %3603 = vpow2.f32 %v3064_v63 }
0x2adb   : > { %v3602_v62 = vpop.eup %3601 }
0x2adc   : > { %2690 = vrot.lane.b32.xlu0 %v3602_v62, %s3664_s28 }
0x2add   : > { %v3604_v1 = vpop.eup %3603 }
0x2ade   : > { %v2681_v2 = vadd.f32 1.0, %v3604_v1 }
0x2ae0   : > { %3605 = vrcp.f32 %v2681_v2 }
0x2aed   : > { %v3606_v3 = vpop.eup %3605 }
0x2aee   : > { %v2688_v47 = vmul.f32 %v3606_v3, %v2686_v5 }
0x2b4e   : > { %v2691_v4 = vpop.permute.xlu0 %2690 }
0x2b4f   : > { %v2693_v29 = vmul.f32 %v3606_v3, %v2691_v4 }
0x2b51   : > { %2695 = vrot.lane.b32.xlu1 %v2693_v29, %s3665_s29 }
0x2bc3   : > { %v2696_v6 = vpop.permute.xlu1 %2695 }
0x2bc4   : > { %v2698_v32 = vadd.f32 %v2696_v6, %v2688_v47 }
0x2bc6   : > { %3607 = vtanh.f32 %v2698_v32 }
0x2bd3   : > { %v3608_v10 = vpop.eup %3607 }
0x2bd4   : > { %2701 = vrot.lane.b32.xlu0 %v3608_v10, %s3664_s28 }
0x2c46   : > { %v2702_v13 = vpop.permute.xlu0 %2701 }
0x2c47   : > { %v2704_v38 = vmul.f32 %v3606_v3, %v2702_v13 }
0x2c49   : > { %v2761_v16 = vsel %vm2757_vm4, %v2704_v38, %v2759_v14  ;;  %v2815_v17 = vsel %vm2811_vm5, %v2704_v38, %v2813_v15 }
0x2c4a   : > { %v2817_v18 = vrot.slane %v2761_v16, 6  ;;  %v2820_v52 = vrot.slane %v2815_v17, 6 }
0x2c4c   : > { %v2822_v19 = vsel %vm1190_vm1, %v2817_v18, %v2820_v52 }
0x2c4d   : > { %v2823_v20 = vpack.c.bf16 %v2822_v19, %v2822_v19 }
0x2c4f   : > { %2836 = vrot.lane.b32.xlu1 %v2823_v20, %s3665_s29 }
0x2cc1   : > { %v2837_v21 = vpop.permute.xlu1 %2836 }
0x2cc2   : > { %3406 = vmatmul.mubr.msk.bf16.vlgmr.msra.gmra.mxu1 %vm518_vm0, %v2837_v21 }
0x2d82   : > { %v2887_v23 = vpop.f32.mrf.mxu1 }
0x2d83   : > { %v2888_v24 = vadd.f32 %v3066_v22, %v2887_v23 }
0x2d84   : > { %v3407_v25 = vpop.f32.mrf.mxu1 }
0x2d85   : > { %2894 = vst.msk [vmem:[#allocation5] sm:$0x3] %vm2893_vm6, %v2888_v24 }
0x2d86   : > { %v2890_v26 = vpop.f32.mrf.mxu1 }
0x2d88   : > { %v3408_v27 = vpop.f32.mrf.mxu1 }
0x2d89 PF: > { %p3413_p10 = scmp.eq.s32.totalorder %s3741_s0, 7  ;;  %s3666_s23 = smov [#allocation5]  }
0x2d8a   : > { %s2902_s29 = sshll.u32 %s3666_s23, 4  ;;  %s2903_s29 = int_to_ptr.vmem [resolvable:$true] %s2902_s29 }
0x2d8b   : > { %s3621_s14 = scalar_lea.vmem %s2903_s29, 32  ;;  %p3628_p0 = scmp.lt.s32.totalorder %s2903_s29, %s2903_s29 }
0x2d8c   : > { %p3622_p11 = scmp.ne.s32.totalorder %s2903_s29, %s3621_s14  ;;  %p3629_p1 = scmp.lt.s32.totalorder %s3621_s14, %s3621_s14 }
0x2d8e   : > { %p3623_p12 = pnand %p3622_p11, %p3413_p10  ;;  %p3630_p2 = por %p3629_p1, %p3628_p0 }
0x2d90   : > { %p3624_p13 = pneg %p3623_p12 }
0x2d92   : > { %p3631_p3 = pnand %p3630_p2, %p3624_p13 }
0x2d94   : > { %3634 = shalt.err (!%p3631_p3)
}
0x2d95   : > { %3410 = dma.vmem_to_hbm [thread:$0]  (%p3413_p10), %s2903_s29, 32, %s4243_s12, [#allocation6]  }
0x2d96   : > { %3652 = dma.done.wait (%p3413_p10), [#allocation6], 32  }
0x2d97   : > { %3654 = vsyncadd (%p3413_p10), [#allocation6], 4294967264 }
0x2d98 PF: > { %s29_s26 = sadd.s32 1, %s3657_s26  }
0x2d99   : > { %p26_p4 = scmp.ge.s32.totalorder %s29_s26, 10  }
0x2d9b   :  { %28 = sbr.rel (!%p26_p4) target bundleno = 16 (0x10), region = 96 }
0x2da0   :  { %2915 = vsyncpa [#allocation6], 1 }
0x2da1   :  { %2917 = vsyncpa [#allocation6 + $0x1], 1 }

</bundles_post_ra>
